<compile_context>
chip_gen: v6e
topology: v6e:2x2x1
jax: 0.10.0
libtpu: 0.0.40
codegen_flags: <defaults>
</compile_context>

<pallas_src>
import functools

import jax
import jax.numpy as jnp
from jax.experimental import pallas as pl
from jax.experimental.pallas import tpu as pltpu


# ---------------------------------------------------------------------------
# Fused kernel: one (batch, output-row-tile) grid step
# ---------------------------------------------------------------------------
def _fused_block_kernel(*refs, stride, th, has_sc_conv, add_residual,
                        mm_dtype, dw_dtype):
    s = stride
    n_x = 1 if s == 1 else s                 # one full-width x, or s column phases
    x_refs = refs[:n_x]
    w1_ref, w2_ref, w3_ref = refs[n_x:n_x + 3]
    idx = n_x + 3
    wsc_ref = None
    if has_sc_conv:
        wsc_ref = refs[idx]
        idx += 1
    o_ref = refs[idx]

    th_in = (th - 1) * s + 3                 # input rows feeding th output rows
    c_in = x_refs[0].shape[3]
    w_x = x_refs[0].shape[2]                 # full W (s==1) or W_out (s>1 phases)
    c_exp = w1_ref.shape[1]
    c_out = w3_ref.shape[1]

    r = pl.program_id(1)
    row0 = pl.multiple_of(r * (th * s), th * s)     # first H-padded input row

    def mm(lhs, w_ref_):
        rhs = w_ref_[...]
        if mm_dtype is not None:                    # bf16 MXU path (default)
            lhs = lhs.astype(mm_dtype)
            rhs = rhs.astype(mm_dtype)
        return jnp.dot(lhs, rhs, preferred_element_type=jnp.float32)

    def expand(x_ref_):
        # 1x1 expand conv + ReLU on one th_in-row window (stays in VMEM).
        # NOTE: the (th_in, W) -> (th_in*W,) merge is free when W % 8 == 0.
        xt = x_ref_[0, pl.ds(row0, th_in), :, :]            # (th_in, w_x, Cin)
        ee = mm(xt.reshape(th_in * w_x, c_in), w1_ref)
        return jnp.maximum(ee, 0.0).reshape(th_in, w_x, c_exp)   # f32

    # ---- depthwise 3x3 tap sources (W direction) ---------------------------
    col = jax.lax.broadcasted_iota(jnp.int32, (1, w_x, 1), 1)
    if s == 1:
        e = expand(x_refs[0])
        # W-neighbours via XLU rolls on the f32 tensor + edge masks.
        e_k0 = jnp.where(col > 0, pltpu.roll(e, shift=1, axis=1), 0.0)
        e_k2 = jnp.where(col < w_x - 1, pltpu.roll(e, shift=w_x - 1, axis=1), 0.0)
        e_k1 = e
    else:
        # Column phase p holds input columns {p, p+s, ...}: for output col ow
        #   kw=1 tap -> phase0[ow], kw=2 tap -> phase1[ow] (right edge is
        #   zero-padded in the wrapper), kw=0 tap -> phase_{s-1}[ow-1].
        ph = [expand(xr) for xr in x_refs]
        e_k1 = ph[0]
        e_k2 = ph[1]
        e_k0 = jnp.where(col > 0, pltpu.roll(ph[s - 1], shift=1, axis=1), 0.0)
    # Tap accumulation dtype (bf16 on v6e/v7x halves the binding VALU work).
    e_k0, e_k1, e_k2 = (t.astype(dw_dtype) for t in (e_k0, e_k1, e_k2))
    w2c = w2_ref[...].astype(dw_dtype)                       # (3, 3, Cexp)

    def rows(t, kh):
        # Rows j*s + kh for j in [0, th): leading-dim slices / reshape only.
        if s == 1:
            return t[kh:kh + th]
        b = max(0, kh - (s - 1))                 # b + (kh-b) == kh, b + s*th <= th_in
        return t[b:b + s * th].reshape(th, s, w_x, c_exp)[:, kh - b]

    acc = None
    for kh in range(3):                                       # static unroll
        part = (rows(e_k0, kh) * w2c[kh, 0]
                + rows(e_k1, kh) * w2c[kh, 1]
                + rows(e_k2, kh) * w2c[kh, 2])
        acc = part if acc is None else acc + part
    acc = jnp.maximum(acc, 0.0)                               # (th, w_x, Cexp)

    # ---- project 1x1 conv ---------------------------------------------------
    y = mm(acc.reshape(th * w_x, c_exp), w3_ref).reshape(th, w_x, c_out)

    # ---- residual / 1x1-conv shortcut (stride == 1 only), fused -------------
    if add_residual:
        xr = x_refs[0][0, pl.ds(row0 + 1, th), :, :]          # (th, W, Cin)
        if has_sc_conv:
            y = y + mm(xr.reshape(th * w_x, c_in), wsc_ref).reshape(th, w_x, c_out)
        else:
            y = y + xr.astype(jnp.float32)

    o_ref[0] = y.astype(o_ref.dtype)


# ---------------------------------------------------------------------------
# Wrapper
# ---------------------------------------------------------------------------
def _vmem_capacity_bytes():
    try:
        return int(pltpu.get_tpu_info().vmem_capacity_bytes)
    except Exception:
        return 64 << 20        # conservative default (v7x per-TensorCore VMEM)


def _pick_row_tile(n, h_out, w, c_exp, stride, dw_bytes, budget_bytes,
                   max_rows=64):
    """Largest divisor of h_out (<= max_rows) whose working set fits budget."""
    feas = []
    for th in range(1, min(h_out, max_rows) + 1):
        if h_out % th:
            continue
        th_in = (th - 1) * stride + 3
        foot = (th_in * w * c_exp * 4                       # f32 expand output
                + (3 * th_in + 2 * th) * w * c_exp * dw_bytes)
        if foot <= budget_bytes:
            feas.append(th)
    if not feas:
        return 1
    best = max(feas)
    # v7x megacore: prefer an even total tile count so both TCs stay busy.
    even = [t for t in feas if (n * (h_out // t)) % 2 == 0]
    if even and 2 * max(even) >= best:
        best = max(even)
    return best


def mobilenet_block_nhwc(x_nhwc, params, *, stride,
                         compute_dtype=jnp.bfloat16, dw_dtype=None,
                         pad_out_lanes=None):
    """Fused expand -> depthwise -> project (+ residual) MobileNetV2 block, NHWC.

    compute_dtype: MXU input dtype for the 1x1 matmuls (f32 accumulation).
                   None keeps the exact input-dtype (f32) path.
    dw_dtype:      VPU dtype for the depthwise taps; defaults to compute_dtype.
                   Pass jnp.float32 on v5e (no bf16 VPU there).
    pad_out_lanes: zero-pad Cout to a multiple of 128 for lane-dense stores
                   (sliced off in the wrapper).  None = auto heuristic.
    """
    if stride not in (1, 2, 3):
        raise NotImplementedError("stride must be 1, 2 or 3")
    n, h, w, c_in = x_nhwc.shape
    w1, w2, w3 = params["w1"], params["w2"], params["w3"]
    c_exp, c_out = w1.shape[1], w3.shape[1]
    has_sc_conv = "w_sc" in params
    add_residual = stride == 1
    if add_residual and not has_sc_conv and c_in != c_out:
        raise ValueError("identity residual requires in_planes == out_planes")

    mm_dtype = None if compute_dtype is None else jnp.dtype(compute_dtype)
    dw_dt = (jnp.dtype(dw_dtype) if dw_dtype is not None
             else (mm_dtype or jnp.dtype(jnp.float32)))

    h_out = (h - 1) // stride + 1
    w_out = (w - 1) // stride + 1

    # Lane-dense output stores: pad Cout to a 128 multiple only when the extra
    # HBM write bytes are cheap; never for the identity residual.
    if pad_out_lanes is None:
        pad_out_lanes = (c_out % 128 != 0 and c_out >= 96
                         and not (add_residual and not has_sc_conv))
    c_out_p = c_out
    if pad_out_lanes and c_out % 128 != 0 and not (add_residual and not has_sc_conv):
        c_out_p = ((c_out + 127) // 128) * 128

    cap = _vmem_capacity_bytes()
    budget = max(4 << 20, min(cap // 5, 24 << 20))
    th = _pick_row_tile(n, h_out, w, c_exp, stride, dw_dt.itemsize, budget)
    th_in = (th - 1) * stride + 3

    # Weights: pre-cast to the MXU/VPU dtypes (halves weight DMA) + lane pad.
    wdt = mm_dtype if mm_dtype is not None else w1.dtype
    w1c = w1.astype(wdt)
    w3c = w3.astype(wdt)
    w2c = w2.astype(dw_dt)
    if c_out_p != c_out:
        w3c = jnp.pad(w3c, ((0, 0), (0, c_out_p - c_out)))
    wsc_c = None
    if has_sc_conv:
        wsc_c = params["w_sc"].astype(wdt)
        if c_out_p != c_out:
            wsc_c = jnp.pad(wsc_c, ((0, 0), (0, c_out_p - c_out)))

    # 1-row zero halo along H only; the W halo is handled in-kernel / by the
    # zero-padded column phases for stride > 1.
    xp = jnp.pad(x_nhwc, ((0, 0), (1, 1), (0, 0), (0, 0)))
    if stride == 1:
        x_inputs = [xp]
        xin_w = w
    else:
        x_inputs = []
        for p in range(stride):
            v = xp[:, :, p::stride, :]
            if v.shape[2] < w_out:
                v = jnp.pad(v, ((0, 0), (0, 0), (0, w_out - v.shape[2]), (0, 0)))
            x_inputs.append(v)
        xin_w = w_out
    n_x = len(x_inputs)

    # TODO(synk): block x along H (halo'd th_in-row windows via manual DMA) so
    #             residency is O(tile) instead of O(image) for large inputs.
    # TODO(synk): pipeline_mode=pl.Buffered(1) on the constant-index weight
    #             specs would drop their second VMEM buffer on late layers.
    in_specs = [pl.BlockSpec((1, h + 2, xin_w, c_in), lambda nn, rr: (nn, 0, 0, 0))
                for _ in range(n_x)]
    in_specs += [
        pl.BlockSpec((c_in, c_exp), lambda nn, rr: (0, 0)),
        pl.BlockSpec((3, 3, c_exp), lambda nn, rr: (0, 0, 0)),
        pl.BlockSpec((c_exp, c_out_p), lambda nn, rr: (0, 0)),
    ]
    inputs = list(x_inputs) + [w1c, w2c, w3c]
    if has_sc_conv:
        in_specs.append(pl.BlockSpec((c_in, c_out_p), lambda nn, rr: (0, 0)))
        inputs.append(wsc_c)

    itemsize = x_nhwc.dtype.itemsize
    wbytes = (w1c.size * w1c.dtype.itemsize + w2c.size * w2c.dtype.itemsize
              + w3c.size * w3c.dtype.itemsize
              + (wsc_c.size * wsc_c.dtype.itemsize if has_sc_conv else 0))
    est = (2 * (h + 2) * (n_x * xin_w) * c_in * itemsize       # x blocks (x2 buf)
           + 2 * th * w_out * c_out_p * itemsize               # out block (x2 buf)
           + 2 * wbytes                                        # weights (x2 buf)
           + th_in * (n_x * xin_w) * c_exp * 4                 # f32 expand output
           + (3 * th_in + 2 * th) * xin_w * c_exp * dw_dt.itemsize)
    vmem_limit = int(min(max(2 * est + (8 << 20), 32 << 20), cap * 3 // 5))

    flops = int(2 * n * (h_out // th) * th_in * (n_x * xin_w) * c_in * c_exp
                + 2 * 9 * n * h_out * xin_w * c_exp
                + 2 * n * h_out * w_out * c_exp * c_out_p
                + (2 * n * h * w * c_in * c_out_p if has_sc_conv else 0))
    bytes_accessed = int(sum(v.size for v in x_inputs) * itemsize
                         + n * h_out * w_out * c_out_p * itemsize + wbytes)

    kernel = functools.partial(
        _fused_block_kernel, stride=stride, th=th,
        has_sc_conv=has_sc_conv, add_residual=add_residual,
        mm_dtype=mm_dtype, dw_dtype=dw_dt)

    out = pl.pallas_call(
        kernel,
        out_shape=jax.ShapeDtypeStruct((n, h_out, w_out, c_out_p), x_nhwc.dtype),
        grid=(n, h_out // th),
        in_specs=in_specs,
        out_specs=pl.BlockSpec((1, th, w_out, c_out_p),
                               lambda nn, rr: (nn, rr, 0, 0)),
        compiler_params=pltpu.CompilerParams(
            dimension_semantics=("parallel", "parallel"),
            vmem_limit_bytes=vmem_limit),
        cost_estimate=pl.CostEstimate(
            flops=flops, transcendentals=0, bytes_accessed=bytes_accessed),
    )(*inputs)

    if c_out_p != c_out:
        out = out[..., :c_out]      # fused into the NHWC->NCHW transpose by XLA
    return out


def block_forward(x_nchw, params, *, stride, compute_dtype=jnp.bfloat16,
                  dw_dtype=None):
    x = jnp.transpose(x_nchw, (0, 2, 3, 1))                    # NCHW -> NHWC
    out = mobilenet_block_nhwc(x, params, stride=stride,
                               compute_dtype=compute_dtype, dw_dtype=dw_dtype)
    return jnp.transpose(out, (0, 3, 1, 2))                    # NHWC -> NCHW


def init_params(key, in_planes, out_planes, expansion, stride):
    planes = expansion * in_planes
    k1, k2, k3, k4 = jax.random.split(key, 4)
    params = {
        # 1x1 weights stored as (Cin, Cout)  (== PyTorch (Cout,Cin,1,1).T)
        "w1": 0.1 * jax.random.normal(k1, (in_planes, planes), jnp.float32),
        # depthwise weight stored as (3, 3, C) (== PyTorch (C,1,3,3) transposed)
        "w2": 0.1 * jax.random.normal(k2, (3, 3, planes), jnp.float32),
        "w3": 0.1 * jax.random.normal(k3, (planes, out_planes), jnp.float32),
    }
    if stride == 1 and in_planes != out_planes:
        params["w_sc"] = 0.1 * jax.random.normal(
            k4, (in_planes, out_planes), jnp.float32)
    return params


# ---------------------------------------------------------------------------
# Pure-JAX reference (lax conv) for the correctness check
# ---------------------------------------------------------------------------
def block_reference(x_nchw, params, *, stride, in_planes, out_planes):
    def conv(x, w_oihw, s, groups):
        return jax.lax.conv_general_dilated(
            x, w_oihw, window_strides=(s, s),
            padding=[(w_oihw.shape[2] // 2,) * 2, (w_oihw.shape[3] // 2,) * 2],
            feature_group_count=groups,
            dimension_numbers=("NCHW", "OIHW", "NCHW"))

    planes = params["w1"].shape[1]
    w1 = jnp.transpose(params["w1"], (1, 0))[:, :, None, None]
    w2 = jnp.transpose(params["w2"], (2, 0, 1))[:, None, :, :]
    w3 = jnp.transpose(params["w3"], (1, 0))[:, :, None, None]
    out = jax.nn.relu(conv(x_nchw, w1, 1, 1))
    out = jax.nn.relu(conv(out, w2, stride, planes))
    out = conv(out, w3, 1, 1)
    if stride == 1:
        if in_planes != out_planes:
            w_sc = jnp.transpose(params["w_sc"], (1, 0))[:, :, None, None]
            sc = conv(x_nchw, w_sc, 1, 1)
        else:
            sc = x_nchw
        out = out + sc
    return out


if __name__ == "__main__":
    N, Hs, Ws = 2, 16, 16
    configs = [
        # (in_planes, out_planes, expansion, stride, compute_dtype, tol)
        (4, 8, 6, 1, None, 1e-4),            # exact f32, 1x1-conv shortcut
        (4, 8, 6, 2, None, 1e-4),            # exact f32, stride-2 phase path
        (8, 8, 6, 1, jnp.bfloat16, 5e-2),    # bf16 MXU+VPU, identity residual
        (4, 8, 6, 2, jnp.bfloat16, 5e-2),    # bf16 MXU+VPU, stride 2
        (16, 96, 6, 1, jnp.bfloat16, 5e-2),  # bf16, lane-padded Cout + shortcut conv
    ]
    key = jax.random.PRNGKey(0)
    for in_planes, out_planes, expansion, stride, cdt, tol in configs:
        key, kx, kp = jax.random.split(key, 3)
        x = jax.random.normal(kx, (N, in_planes, Hs, Ws), jnp.float32)
        params = init_params(kp, in_planes, out_planes, expansion, stride)

        out = block_forward(x, params, stride=stride, compute_dtype=cdt)
        out = jax.block_until_ready(out)

        ref = block_reference(x, params, stride=stride,
                              in_planes=in_planes, out_planes=out_planes)
        h_out = (Hs - 1) // stride + 1
        w_out = (Ws - 1) // stride + 1
        assert out.shape == ref.shape == (N, out_planes, h_out, w_out), \
            (out.shape, ref.shape)
        err = float(jnp.max(jnp.abs(out - ref)))
        assert jnp.allclose(out, ref, atol=tol, rtol=tol), \
            f"mismatch vs reference (stride={stride}, dtype={cdt}, max_err={err})"

    print("KERNEL_OK")
</pallas_src>

<mosaic_0001>
module attributes {stable_mosaic.version = 11 : i64} {
  func.func @_fused_block_kernel(%arg0: i32, %arg1: i32, %arg2: memref<1x18x16x4xf32, #tpu.memory_space<vmem>>, %arg3: memref<4x24xf32, #tpu.memory_space<vmem>>, %arg4: memref<3x3x24xf32, #tpu.memory_space<vmem>>, %arg5: memref<24x8xf32, #tpu.memory_space<vmem>>, %arg6: memref<4x8xf32, #tpu.memory_space<vmem>>, %arg7: memref<1x16x16x8xf32, #tpu.memory_space<vmem>>) attributes {dimension_semantics = [#tpu.dimension_semantics<parallel>, #tpu.dimension_semantics<parallel>], iteration_bounds = array<i64: 2, 1>, scalar_prefetch = 0 : i64, scratch_operands = 0 : i64, tpu.core_type = #tpu.core_type<tc>, window_params = [{transform_indices = @transform_0, window_bounds = array<i64: 1, 18, 16, 4>}, {pipeline_mode = #tpu.pipeline_mode<synchronous>, transform_indices = @transform_1, window_bounds = array<i64: 4, 24>}, {pipeline_mode = #tpu.pipeline_mode<synchronous>, transform_indices = @transform_2, window_bounds = array<i64: 3, 3, 24>}, {pipeline_mode = #tpu.pipeline_mode<synchronous>, transform_indices = @transform_3, window_bounds = array<i64: 24, 8>}, {pipeline_mode = #tpu.pipeline_mode<synchronous>, transform_indices = @transform_4, window_bounds = array<i64: 4, 8>}, {transform_indices = @transform_5, window_bounds = array<i64: 1, 16, 16, 8>}]} {
    %c16_i32 = arith.constant 16 : i32
    %0 = arith.muli %arg1, %c16_i32 : i32
    %1 = tpu.assume_multiple %0, 16 : i32
    %2 = tpu.iota {dimensions = array<i32: 1>} : vector<1x16x1xi32>
    %c0 = arith.constant 0 : index
    %3 = arith.index_cast %1 : i32 to index
    %c0_0 = arith.constant 0 : index
    %c0_1 = arith.constant 0 : index
    %4 = vector.load %arg2[%c0, %3, %c0_0, %c0_1] : memref<1x18x16x4xf32, #tpu.memory_space<vmem>>, vector<1x18x16x4xf32>
    %5 = vector.shape_cast %4 : vector<1x18x16x4xf32> to vector<18x16x4xf32>
    %6 = vector.shape_cast %5 : vector<18x16x4xf32> to vector<288x4xf32>
    %c0_2 = arith.constant 0 : index
    %c0_3 = arith.constant 0 : index
    %7 = vector.load %arg3[%c0_2, %c0_3] : memref<4x24xf32, #tpu.memory_space<vmem>>, vector<4x24xf32>
    %cst = arith.constant dense<0.000000e+00> : vector<288x24xf32>
    %8 = tpu.matmul %6, %7, %cst {dimension_numbers = #tpu.dot_dimension_numbers<[1], [0], [0], [1], [0, 0, 1, 1], [], []>} : vector<288x4xf32>, vector<4x24xf32>, vector<288x24xf32> -> vector<288x24xf32>
    %cst_4 = arith.constant 0.000000e+00 : f32
    %9 = vector.broadcast %cst_4 : f32 to vector<288x24xf32>
    %10 = arith.maximumf %8, %9 : vector<288x24xf32>
    %11 = vector.shape_cast %10 : vector<288x24xf32> to vector<18x16x24xf32>
    %c0_i32 = arith.constant 0 : i32
    %12 = vector.broadcast %c0_i32 : i32 to vector<1x16x1xi32>
    %13 = arith.cmpi sgt, %2, %12 : vector<1x16x1xi32>
    %c1_i32 = arith.constant 1 : i32
    %14 = tpu.dynamic_rotate %11 by %c1_i32 dim 1 : vector<18x16x24xf32>, i32 -> vector<18x16x24xf32>
    %cst_5 = arith.constant 0.000000e+00 : f32
    %15 = vector.shape_cast %13 : vector<1x16x1xi1> to vector<1x16x1xi1>
    %16 = vector.broadcast %15 : vector<1x16x1xi1> to vector<18x16x24xi1>
    %17 = vector.broadcast %cst_5 : f32 to vector<18x16x24xf32>
    %18 = arith.select %16, %14, %17 : vector<18x16x24xi1>, vector<18x16x24xf32>
    %c15_i32 = arith.constant 15 : i32
    %19 = vector.broadcast %c15_i32 : i32 to vector<1x16x1xi32>
    %20 = arith.cmpi slt, %2, %19 : vector<1x16x1xi32>
    %c15_i32_6 = arith.constant 15 : i32
    %21 = tpu.dynamic_rotate %11 by %c15_i32_6 dim 1 : vector<18x16x24xf32>, i32 -> vector<18x16x24xf32>
    %cst_7 = arith.constant 0.000000e+00 : f32
    %22 = vector.shape_cast %20 : vector<1x16x1xi1> to vector<1x16x1xi1>
    %23 = vector.broadcast %22 : vector<1x16x1xi1> to vector<18x16x24xi1>
    %24 = vector.broadcast %cst_7 : f32 to vector<18x16x24xf32>
    %25 = arith.select %23, %21, %24 : vector<18x16x24xi1>, vector<18x16x24xf32>
    %c0_8 = arith.constant 0 : index
    %c0_9 = arith.constant 0 : index
    %c0_10 = arith.constant 0 : index
    %26 = vector.load %arg4[%c0_8, %c0_9, %c0_10] : memref<3x3x24xf32, #tpu.memory_space<vmem>>, vector<3x3x24xf32>
    %27 = vector.extract_strided_slice %18 {offsets = [0, 0, 0], sizes = [16, 16, 24], strides = [1, 1, 1]} : vector<18x16x24xf32> to vector<16x16x24xf32>
    %28 = vector.extract_strided_slice %26 {offsets = [0, 0, 0], sizes = [1, 1, 24], strides = [1, 1, 1]} : vector<3x3x24xf32> to vector<1x1x24xf32>
    %29 = vector.shape_cast %28 : vector<1x1x24xf32> to vector<24xf32>
    %30 = vector.shape_cast %29 : vector<24xf32> to vector<1x1x24xf32>
    %31 = vector.broadcast %30 : vector<1x1x24xf32> to vector<16x16x24xf32>
    %32 = arith.mulf %27, %31 : vector<16x16x24xf32>
    %33 = vector.extract_strided_slice %11 {offsets = [0, 0, 0], sizes = [16, 16, 24], strides = [1, 1, 1]} : vector<18x16x24xf32> to vector<16x16x24xf32>
    %34 = vector.extract_strided_slice %26 {offsets = [0, 1, 0], sizes = [1, 1, 24], strides = [1, 1, 1]} : vector<3x3x24xf32> to vector<1x1x24xf32>
    %35 = vector.shape_cast %34 : vector<1x1x24xf32> to vector<24xf32>
    %36 = vector.shape_cast %35 : vector<24xf32> to vector<1x1x24xf32>
    %37 = vector.broadcast %36 : vector<1x1x24xf32> to vector<16x16x24xf32>
    %38 = arith.mulf %33, %37 : vector<16x16x24xf32>
    %39 = arith.addf %32, %38 : vector<16x16x24xf32>
    %40 = vector.extract_strided_slice %25 {offsets = [0, 0, 0], sizes = [16, 16, 24], strides = [1, 1, 1]} : vector<18x16x24xf32> to vector<16x16x24xf32>
    %41 = vector.extract_strided_slice %26 {offsets = [0, 2, 0], sizes = [1, 1, 24], strides = [1, 1, 1]} : vector<3x3x24xf32> to vector<1x1x24xf32>
    %42 = vector.shape_cast %41 : vector<1x1x24xf32> to vector<24xf32>
    %43 = vector.shape_cast %42 : vector<24xf32> to vector<1x1x24xf32>
    %44 = vector.broadcast %43 : vector<1x1x24xf32> to vector<16x16x24xf32>
    %45 = arith.mulf %40, %44 : vector<16x16x24xf32>
    %46 = arith.addf %39, %45 : vector<16x16x24xf32>
    %47 = vector.extract_strided_slice %18 {offsets = [1, 0, 0], sizes = [16, 16, 24], strides = [1, 1, 1]} : vector<18x16x24xf32> to vector<16x16x24xf32>
    %48 = vector.extract_strided_slice %26 {offsets = [1, 0, 0], sizes = [1, 1, 24], strides = [1, 1, 1]} : vector<3x3x24xf32> to vector<1x1x24xf32>
    %49 = vector.shape_cast %48 : vector<1x1x24xf32> to vector<24xf32>
    %50 = vector.shape_cast %49 : vector<24xf32> to vector<1x1x24xf32>
    %51 = vector.broadcast %50 : vector<1x1x24xf32> to vector<16x16x24xf32>
    %52 = arith.mulf %47, %51 : vector<16x16x24xf32>
    %53 = vector.extract_strided_slice %11 {offsets = [1, 0, 0], sizes = [16, 16, 24], strides = [1, 1, 1]} : vector<18x16x24xf32> to vector<16x16x24xf32>
    %54 = vector.extract_strided_slice %26 {offsets = [1, 1, 0], sizes = [1, 1, 24], strides = [1, 1, 1]} : vector<3x3x24xf32> to vector<1x1x24xf32>
    %55 = vector.shape_cast %54 : vector<1x1x24xf32> to vector<24xf32>
    %56 = vector.shape_cast %55 : vector<24xf32> to vector<1x1x24xf32>
    %57 = vector.broadcast %56 : vector<1x1x24xf32> to vector<16x16x24xf32>
    %58 = arith.mulf %53, %57 : vector<16x16x24xf32>
    %59 = arith.addf %52, %58 : vector<16x16x24xf32>
    %60 = vector.extract_strided_slice %25 {offsets = [1, 0, 0], sizes = [16, 16, 24], strides = [1, 1, 1]} : vector<18x16x24xf32> to vector<16x16x24xf32>
    %61 = vector.extract_strided_slice %26 {offsets = [1, 2, 0], sizes = [1, 1, 24], strides = [1, 1, 1]} : vector<3x3x24xf32> to vector<1x1x24xf32>
    %62 = vector.shape_cast %61 : vector<1x1x24xf32> to vector<24xf32>
    %63 = vector.shape_cast %62 : vector<24xf32> to vector<1x1x24xf32>
    %64 = vector.broadcast %63 : vector<1x1x24xf32> to vector<16x16x24xf32>
    %65 = arith.mulf %60, %64 : vector<16x16x24xf32>
    %66 = arith.addf %59, %65 : vector<16x16x24xf32>
    %67 = arith.addf %46, %66 : vector<16x16x24xf32>
    %68 = vector.extract_strided_slice %18 {offsets = [2, 0, 0], sizes = [16, 16, 24], strides = [1, 1, 1]} : vector<18x16x24xf32> to vector<16x16x24xf32>
    %69 = vector.extract_strided_slice %26 {offsets = [2, 0, 0], sizes = [1, 1, 24], strides = [1, 1, 1]} : vector<3x3x24xf32> to vector<1x1x24xf32>
    %70 = vector.shape_cast %69 : vector<1x1x24xf32> to vector<24xf32>
    %71 = vector.shape_cast %70 : vector<24xf32> to vector<1x1x24xf32>
    %72 = vector.broadcast %71 : vector<1x1x24xf32> to vector<16x16x24xf32>
    %73 = arith.mulf %68, %72 : vector<16x16x24xf32>
    %74 = vector.extract_strided_slice %11 {offsets = [2, 0, 0], sizes = [16, 16, 24], strides = [1, 1, 1]} : vector<18x16x24xf32> to vector<16x16x24xf32>
    %75 = vector.extract_strided_slice %26 {offsets = [2, 1, 0], sizes = [1, 1, 24], strides = [1, 1, 1]} : vector<3x3x24xf32> to vector<1x1x24xf32>
    %76 = vector.shape_cast %75 : vector<1x1x24xf32> to vector<24xf32>
    %77 = vector.shape_cast %76 : vector<24xf32> to vector<1x1x24xf32>
    %78 = vector.broadcast %77 : vector<1x1x24xf32> to vector<16x16x24xf32>
    %79 = arith.mulf %74, %78 : vector<16x16x24xf32>
    %80 = arith.addf %73, %79 : vector<16x16x24xf32>
    %81 = vector.extract_strided_slice %25 {offsets = [2, 0, 0], sizes = [16, 16, 24], strides = [1, 1, 1]} : vector<18x16x24xf32> to vector<16x16x24xf32>
    %82 = vector.extract_strided_slice %26 {offsets = [2, 2, 0], sizes = [1, 1, 24], strides = [1, 1, 1]} : vector<3x3x24xf32> to vector<1x1x24xf32>
    %83 = vector.shape_cast %82 : vector<1x1x24xf32> to vector<24xf32>
    %84 = vector.shape_cast %83 : vector<24xf32> to vector<1x1x24xf32>
    %85 = vector.broadcast %84 : vector<1x1x24xf32> to vector<16x16x24xf32>
    %86 = arith.mulf %81, %85 : vector<16x16x24xf32>
    %87 = arith.addf %80, %86 : vector<16x16x24xf32>
    %88 = arith.addf %67, %87 : vector<16x16x24xf32>
    %cst_11 = arith.constant 0.000000e+00 : f32
    %89 = vector.broadcast %cst_11 : f32 to vector<16x16x24xf32>
    %90 = arith.maximumf %88, %89 : vector<16x16x24xf32>
    %91 = vector.shape_cast %90 : vector<16x16x24xf32> to vector<256x24xf32>
    %c0_12 = arith.constant 0 : index
    %c0_13 = arith.constant 0 : index
    %92 = vector.load %arg5[%c0_12, %c0_13] : memref<24x8xf32, #tpu.memory_space<vmem>>, vector<24x8xf32>
    %cst_14 = arith.constant dense<0.000000e+00> : vector<256x8xf32>
    %93 = tpu.matmul %91, %92, %cst_14 {dimension_numbers = #tpu.dot_dimension_numbers<[1], [0], [0], [1], [0, 0, 1, 1], [], []>} : vector<256x24xf32>, vector<24x8xf32>, vector<256x8xf32> -> vector<256x8xf32>
    %94 = vector.shape_cast %93 : vector<256x8xf32> to vector<16x16x8xf32>
    %c1_i32_15 = arith.constant 1 : i32
    %95 = arith.addi %1, %c1_i32_15 : i32
    %c0_16 = arith.constant 0 : index
    %96 = arith.index_cast %95 : i32 to index
    %c0_17 = arith.constant 0 : index
    %c0_18 = arith.constant 0 : index
    %97 = vector.load %arg2[%c0_16, %96, %c0_17, %c0_18] : memref<1x18x16x4xf32, #tpu.memory_space<vmem>>, vector<1x16x16x4xf32>
    %98 = vector.shape_cast %97 : vector<1x16x16x4xf32> to vector<16x16x4xf32>
    %99 = vector.shape_cast %98 : vector<16x16x4xf32> to vector<256x4xf32>
    %c0_19 = arith.constant 0 : index
    %c0_20 = arith.constant 0 : index
    %100 = vector.load %arg6[%c0_19, %c0_20] : memref<4x8xf32, #tpu.memory_space<vmem>>, vector<4x8xf32>
    %cst_21 = arith.constant dense<0.000000e+00> : vector<256x8xf32>
    %101 = tpu.matmul %99, %100, %cst_21 {dimension_numbers = #tpu.dot_dimension_numbers<[1], [0], [0], [1], [0, 0, 1, 1], [], []>} : vector<256x4xf32>, vector<4x8xf32>, vector<256x8xf32> -> vector<256x8xf32>
    %102 = vector.shape_cast %101 : vector<256x8xf32> to vector<16x16x8xf32>
    %103 = arith.addf %94, %102 : vector<16x16x8xf32>
    %c0_22 = arith.constant 0 : index
    %c0_23 = arith.constant 0 : index
    %c0_24 = arith.constant 0 : index
    %c0_25 = arith.constant 0 : index
    %104 = vector.load %arg7[%c0_22, %c0_23, %c0_24, %c0_25] : memref<1x16x16x8xf32, #tpu.memory_space<vmem>>, vector<1x16x16x8xf32>
    %105 = vector.shape_cast %104 : vector<1x16x16x8xf32> to vector<16x16x8xf32>
    %106 = vector.shape_cast %103 : vector<16x16x8xf32> to vector<1x16x16x8xf32>
    tpu.vector_store %arg7[%c0_22, %c0_23, %c0_24, %c0_25], %106 {strides = array<i32>} : memref<1x16x16x8xf32, #tpu.memory_space<vmem>>, vector<1x16x16x8xf32>,
    return
  }
  func.func @transform_0(%arg0: i32, %arg1: i32) -> (i32, i32, i32, i32) {
    %c0_i32 = arith.constant 0 : i32
    %c0_i32_0 = arith.constant 0 : i32
    %c0_i32_1 = arith.constant 0 : i32
    %c0_i32_2 = arith.constant 0 : i32
    return %arg0, %c0_i32, %c0_i32_0, %c0_i32_1 : i32, i32, i32, i32
  }
  func.func @transform_1(%arg0: i32, %arg1: i32) -> (i32, i32) {
    %c0_i32 = arith.constant 0 : i32
    %c0_i32_0 = arith.constant 0 : i32
    %c0_i32_1 = arith.constant 0 : i32
    return %c0_i32, %c0_i32_0 : i32, i32
  }
  func.func @transform_2(%arg0: i32, %arg1: i32) -> (i32, i32, i32) {
    %c0_i32 = arith.constant 0 : i32
    %c0_i32_0 = arith.constant 0 : i32
    %c0_i32_1 = arith.constant 0 : i32
    %c0_i32_2 = arith.constant 0 : i32
    return %c0_i32, %c0_i32_0, %c0_i32_1 : i32, i32, i32
  }
  func.func @transform_3(%arg0: i32, %arg1: i32) -> (i32, i32) {
    %c0_i32 = arith.constant 0 : i32
    %c0_i32_0 = arith.constant 0 : i32
    %c0_i32_1 = arith.constant 0 : i32
    return %c0_i32, %c0_i32_0 : i32, i32
  }
  func.func @transform_4(%arg0: i32, %arg1: i32) -> (i32, i32) {
    %c0_i32 = arith.constant 0 : i32
    %c0_i32_0 = arith.constant 0 : i32
    %c0_i32_1 = arith.constant 0 : i32
    return %c0_i32, %c0_i32_0 : i32, i32
  }
  func.func @transform_5(%arg0: i32, %arg1: i32) -> (i32, i32, i32, i32) {
    %c0_i32 = arith.constant 0 : i32
    %c0_i32_0 = arith.constant 0 : i32
    %c0_i32_1 = arith.constant 0 : i32
    return %arg0, %arg1, %c0_i32, %c0_i32_0 : i32, i32, i32, i32
  }
}

</mosaic_0001>

<bundles_post_ra>
// kernel: tpu_custom_call.1
= control target key start
LH: loop header
LB: loop body
LE: loop exit
PB: predicated region body
PF: predicated region fallthrough
CT: control target
= control target key end

     0   :  { %s2871_s18 = smov 0   ;;  %s2873_s19 = smov 0   ;;  %s4748_s0 = inlined_call_operand.vmem [shape: f32[2,18,16,4], index: 0, kind: input, shape index: {}]   ;;  %s4749_s1 = inlined_call_operand.vmem [shape: f32[4,24], index: 1, kind: input, shape index: {}]   ;;  %s4750_s2 = inlined_call_operand.vmem [shape: f32[3,3,24], index: 2, kind: input, shape index: {}]   ;;  %s4751_s3 = inlined_call_operand.vmem [shape: f32[24,8], index: 3, kind: input, shape index: {}]   ;;  %s4752_s4 = inlined_call_operand.vmem [shape: f32[4,8], index: 4, kind: input, shape index: {}]   ;;  %s4753_s5 = inlined_call_operand.vmem [shape: f32[2,16,16,8], index: 5, kind: output, shape index: {}]  }
   0x1   :  { %s2875_s20 = smov 0  }
   0x2 LB: > { %s27_s21 = sadd.s32 1, %s2835_s19  ;;  %p2379_p0 = scmp.ge.s32.totalorder %s2839_s20, 1  ;;  %s2839_s20 = sphi %s2875_s20, %s15_s20   ;;  %s2835_s19 = sphi %s2873_s19, %s4953_s19   ;;  %s2831_s18 = sphi %s2871_s18, %s4952_s18  }
   0x3   : > { %p29_p1 = scmp.ge.s32.totalorder %s27_s21, 2  ;;  %p201_p2 = scmp.lt.s32.totalorder %s2839_s20, 3 }
   0x5   : > { %s4955_s21 = smov (%p29_p1, %s27_s21), 0  ;;  %p202_p3 = pnand %p2379_p0, %p201_p2 }
   0x7   : > { %205 = sbr.rel (%p202_p3) target bundleno = 698 (0x2ba), region = 40 }
   0xc   : > { %v292_v0 = vld [vmem:[%s4749_s1] sm:$0xf]  ;;  %vm402_vm0 = vcmask 1043456   ;;  %p234_p4 = scmp.lt.s32.totalorder %s2831_s18, 1  ;;  %vm293_vm1 = vcmask 31744   ;;  %v1534_v37 = vld [vmem:[%s4751_s3 + $0x10] sm:$0xff]  ;;  %v251_v40 = vlaneseq }
   0xd   : > { %2625 = vmatprep.subr.msk.mxu0 %vm402_vm0, %v292_v0  ;;  %2785 = vmatprep.subr.mxu1 %v1534_v37  ;;  %v1533_v38 = vld [vmem:[%s4751_s3 + $0x8] sm:$0xff]  ;;  %v1532_v39 = vld [vmem:[%s4751_s3] sm:$0xff]  ;;  %vm1535_vm6 = vcmask 195584   ;;  %vm2249_vm7 = vcmask 64512  }
   0xe   : > { %2626 = vmatpush3.msk.msra.mxu0 %vm402_vm0, %v292_v0  ;;  %s4957_s18 = smov (!%p234_p4, %s2831_s18), 1  ;;  %2788 = vmatpush3.msra.mxu1 %v1534_v37  ;;  %v2983_v41 = vshrl.u32 %v251_v40, 7  ;;  %v1892_v42 = vld [vmem:[%s4752_s4] sm:$0xf]  ;;  %v918_v45 = vld [vmem:[%s4750_s2 + $0x4] sm:$0x7] }
   0xf   : > { %s2791_s24 = smul.u32 288, %s4957_s18  ;;  %2681 = vmatprep.subr.mxu0 %v1534_v37  ;;  %2786 = vmatprep.subr.mxu1 %v1533_v38  ;;  %v917_v44 = vld [vmem:[%s4750_s2] sm:$0x7]  ;;  %v919_v51 = vld [vmem:[%s4750_s2 + $0x8] sm:$0x7]  ;;  %s2519_s23 = sshll.u32 %s4957_s18, 8 }
  0x10   : > { %2789 = vmatpush3.msra.mxu1 %v1533_v38  ;;  %v958_v43 = vsub.s32 1, %v2983_v41  ;;  %v922_v46 = vsub.s32 0, %v2983_v41  ;;  %v1026_v47 = vsub.s32 2, %v2983_v41  ;;  %v2999_v49 = vadd.s32 8, %v2983_v41  ;;  %s4655_s26 = scalar_lea.vmem %s4753_s5, %s2519_s23 }
  0x11   : > { %s2900_s27 = scalar_lea.vmem %s4748_s0, %s2791_s24  ;;  %2787 = vmatprep.subr.mxu1 %v1532_v39  ;;  %vm687_vm2 = vcmp.gt.s32.totalorder %v2983_v41, 0  ;;  %vm725_vm3 = vcmp.lt.s32.totalorder %v2983_v41, 1  ;;  %vm840_vm4 = vcmp.lt.s32.totalorder %v2983_v41, 7 }
  0x12   : > { %v256_v1 = vld [vmem:[%s2900_s27] sm:$0xff]  ;;  %v257_v2 = vld [vmem:[%s2900_s27 + $0x8] sm:$0xff]  ;;  %v258_v3 = vld [vmem:[%s2900_s27 + $0x10] sm:$0xff]  ;;  %2790 = vmatpush3.msra.mxu1 %v1532_v39  ;;  %v3004_v52 = vrot.slane %v917_v44, %v958_v43  ;;  %v3008_v54 = vrot.slane %v918_v45, %v958_v43  ;;  %v3011_v56 = vrot.slane %v917_v44, %v922_v46  ;;  %v3013_v57 = vrot.slane %v917_v44, %v1026_v47 }
  0x13   : > { %2627 = vmatprep.mubr.msk.f32.mxu0 %vm293_vm1, %v256_v1  ;;  %v259_v4 = vld [vmem:[%s2900_s27 + $0x18] sm:$0xff]  ;;  %v260_v5 = vld [vmem:[%s2900_s27 + $0x20] sm:$0xff]  ;;  %v261_v6 = vld [vmem:[%s2900_s27 + $0x28] sm:$0xff]  ;;  %2735 = vmatprep.subr.msk.mxu1 %vm402_vm0, %v1892_v42  ;;  %vm803_vm5 = vcmp.lt.s32.totalorder %v2999_v49, 15  ;;  %v3016_v59 = vrot.slane %v918_v45, %v922_v46  ;;  %v3018_v60 = vrot.slane %v919_v51, %v958_v43 }
  0x14   : > { %2628 = vmatmul.mubr.msk.f32.vlgmr.msra.gmra.mxu0 %vm293_vm1, %v257_v2  ;;  %v262_v7 = vld [vmem:[%s2900_s27 + $0x30] sm:$0xff]  ;;  %v263_v8 = vld [vmem:[%s2900_s27 + $0x38] sm:$0xff]  ;;  %v264_v9 = vld [vmem:[%s2900_s27 + $0x40] sm:$0xff] }
  0x15   : > { %2630 = vmatprep.mubr.msk.f32.mxu0 %vm293_vm1, %v258_v3  ;;  %v265_v10 = vld [vmem:[%s2900_s27 + $0x48] sm:$0xff]  ;;  %v266_v11 = vld [vmem:[%s2900_s27 + $0x50] sm:$0xff]  ;;  %v267_v12 = vld [vmem:[%s2900_s27 + $0x58] sm:$0xff]  ;;  %2682 = vmatpush3.msra.mxu0 %v1534_v37  ;;  %v3021_v3 = vrot.slane %v918_v45, %v1026_v47 }
  0x16   : > { %v268_v13 = vld [vmem:[%s2900_s27 + $0x60] sm:$0xff]  ;;  %v269_v14 = vld [vmem:[%s2900_s27 + $0x68] sm:$0xff]  ;;  %v270_v15 = vld [vmem:[%s2900_s27 + $0x70] sm:$0xff]  ;;  %2683 = vmatprep.subr.mxu0 %v1533_v38 }
  0x17   : > { %v271_v16 = vld [vmem:[%s2900_s27 + $0x78] sm:$0xff]  ;;  %v272_v17 = vld [vmem:[%s2900_s27 + $0x80] sm:$0xff]  ;;  %v273_v18 = vld [vmem:[%s2900_s27 + $0x88] sm:$0xff]  ;;  %2684 = vmatpush3.msra.mxu0 %v1533_v38 }
  0x18   : > { %2631 = vmatmul.mubr.msk.f32.gmra.mxu0 %vm293_vm1, %v259_v4  ;;  %v274_v19 = vld [vmem:[%s2900_s27 + $0x90] sm:$0xff]  ;;  %v275_v20 = vld [vmem:[%s2900_s27 + $0x98] sm:$0xff]  ;;  %v276_v21 = vld [vmem:[%s2900_s27 + $0xa0] sm:$0xff]  ;;  %2685 = vmatprep.subr.mxu0 %v1532_v39  ;;  %v3023_v4 = vrot.slane %v919_v51, %v922_v46 }
  0x19   : > { %2633 = vmatprep.mubr.msk.f32.mxu0 %vm293_vm1, %v260_v5  ;;  %v277_v22 = vld [vmem:[%s2900_s27 + $0xa8] sm:$0xff]  ;;  %v278_v23 = vld [vmem:[%s2900_s27 + $0xb0] sm:$0xff]  ;;  %v279_v24 = vld [vmem:[%s2900_s27 + $0xb8] sm:$0xff]  ;;  %2686 = vmatpush3.msra.mxu0 %v1532_v39  ;;  %v3025_v5 = vrot.slane %v919_v51, %v1026_v47 }
  0x1a   : > { %v280_v25 = vld [vmem:[%s2900_s27 + $0xc0] sm:$0xff]  ;;  %v281_v26 = vld [vmem:[%s2900_s27 + $0xc8] sm:$0xff]  ;;  %v282_v27 = vld [vmem:[%s2900_s27 + $0xd0] sm:$0xff] }
  0x1b   : > { %v283_v28 = vld [vmem:[%s2900_s27 + $0xd8] sm:$0xff]  ;;  %v284_v29 = vld [vmem:[%s2900_s27 + $0xe0] sm:$0xff]  ;;  %v285_v30 = vld [vmem:[%s2900_s27 + $0xe8] sm:$0xff] }
  0x1c   : > { %2634 = vmatmul.mubr.msk.f32.gmra.mxu0 %vm293_vm1, %v261_v6  ;;  %v286_v31 = vld [vmem:[%s2900_s27 + $0xf0] sm:$0xff]  ;;  %v287_v32 = vld [vmem:[%s2900_s27 + $0xf8] sm:$0xff]  ;;  %v288_v33 = vld [vmem:[%s2900_s27 + $0x100] sm:$0xff] }
  0x1d   : > { %2636 = vmatprep.mubr.msk.f32.mxu0 %vm293_vm1, %v262_v7  ;;  %v289_v34 = vld [vmem:[%s2900_s27 + $0x108] sm:$0xff]  ;;  %v290_v35 = vld [vmem:[%s2900_s27 + $0x110] sm:$0xff]  ;;  %v291_v36 = vld [vmem:[%s2900_s27 + $0x118] sm:$0xff] }
  0x20   : > { %2637 = vmatmul.mubr.msk.f32.gmra.mxu0 %vm293_vm1, %v263_v8 }
  0x21   : > { %2639 = vmatprep.mubr.msk.f32.mxu0 %vm293_vm1, %v264_v9 }
  0x24   : > { %2640 = vmatmul.mubr.msk.f32.gmra.mxu0 %vm293_vm1, %v265_v10 }
  0x25   : > { %2642 = vmatprep.mubr.msk.f32.mxu0 %vm293_vm1, %v266_v11 }
  0x28   : > { %2643 = vmatmul.mubr.msk.f32.gmra.mxu0 %vm293_vm1, %v267_v12 }
  0x29   : > { %2645 = vmatprep.mubr.msk.f32.mxu0 %vm293_vm1, %v268_v13 }
  0x2c   : > { %2646 = vmatmul.mubr.msk.f32.gmra.mxu0 %vm293_vm1, %v269_v14 }
  0x2d   : > { %2648 = vmatprep.mubr.msk.f32.mxu0 %vm293_vm1, %v270_v15 }
  0x30   : > { %2649 = vmatmul.mubr.msk.f32.gmra.mxu0 %vm293_vm1, %v271_v16 }
  0x31   : > { %2651 = vmatprep.mubr.msk.f32.mxu0 %vm293_vm1, %v272_v17 }
  0x34   : > { %2652 = vmatmul.mubr.msk.f32.gmra.mxu0 %vm293_vm1, %v273_v18 }
  0x35   : > { %2654 = vmatprep.mubr.msk.f32.mxu0 %vm293_vm1, %v274_v19 }
  0x38   : > { %2655 = vmatmul.mubr.msk.f32.gmra.mxu0 %vm293_vm1, %v275_v20 }
  0x39   : > { %2657 = vmatprep.mubr.msk.f32.mxu0 %vm293_vm1, %v276_v21 }
  0x3c   : > { %2658 = vmatmul.mubr.msk.f32.gmra.mxu0 %vm293_vm1, %v277_v22 }
  0x3d   : > { %2660 = vmatprep.mubr.msk.f32.mxu0 %vm293_vm1, %v278_v23 }
  0x40   : > { %2661 = vmatmul.mubr.msk.f32.gmra.mxu0 %vm293_vm1, %v279_v24 }
  0x41   : > { %2663 = vmatprep.mubr.msk.f32.mxu0 %vm293_vm1, %v280_v25 }
  0x44   : > { %2664 = vmatmul.mubr.msk.f32.gmra.mxu0 %vm293_vm1, %v281_v26 }
  0x45   : > { %2666 = vmatprep.mubr.msk.f32.mxu0 %vm293_vm1, %v282_v27 }
  0x48   : > { %2667 = vmatmul.mubr.msk.f32.gmra.mxu0 %vm293_vm1, %v283_v28 }
  0x49   : > { %2669 = vmatprep.mubr.msk.f32.mxu0 %vm293_vm1, %v284_v29 }
  0x4c   : > { %2670 = vmatmul.mubr.msk.f32.gmra.mxu0 %vm293_vm1, %v285_v30 }
  0x4d   : > { %2672 = vmatprep.mubr.msk.f32.mxu0 %vm293_vm1, %v286_v31 }
  0x50   : > { %2673 = vmatmul.mubr.msk.f32.gmra.mxu0 %vm293_vm1, %v287_v32 }
  0x51   : > { %2675 = vmatprep.mubr.msk.f32.mxu0 %vm293_vm1, %v288_v33 }
  0x54   : > { %2676 = vmatmul.mubr.msk.f32.gmra.mxu0 %vm293_vm1, %v289_v34 }
  0x55   : > { %2678 = vmatprep.mubr.msk.f32.mxu0 %vm293_vm1, %v290_v35 }
  0x58   : > { %2679 = vmatmul.mubr.msk.f32.gmra.mxu0 %vm293_vm1, %v291_v36 }
  0xd4   : > { %v2629_v48 = vpop.f32.mrf.mxu0 }
  0xd5   : > { %v652_v50 = vmax.f32 %v2629_v48, 0.0 }
  0xd6   : > { %v472_v53 = vpop.f32.mrf.mxu0 }
  0xd7   : > { %v651_v55 = vmax.f32 %v472_v53, 0.0  ;;  %v707_v58 = vrot.slane %v652_v50, 7  ;;  %v822_v62 = vrot.slane %v652_v50, 1  ;;  %v961_v2 = vmul.f32 %v3004_v52, %v652_v50 }
  0xd8   : > { %v2632_v61 = vpop.f32.mrf.mxu0 }
  0xd9   : > { %v689_v63 = vrot.slane %v651_v55, 7  ;;  %v804_v0 = vrot.slane %v651_v55, 1  ;;  %v654_v1 = vmax.f32 %v2632_v61, 0.0  ;;  %v960_v14 = vmul.f32 %v3004_v52, %v651_v55 }
  0xda   : > { %v482_v6 = vpop.f32.mrf.mxu0 }
  0xdb   : > { %v726_v7 = vsel %vm725_vm3, %v689_v63, %v707_v58  ;;  %v744_v8 = vsel %vm725_vm3, %v707_v58, %v689_v63  ;;  %v841_v9 = vsel %vm840_vm4, %v804_v0, %v822_v62  ;;  %v859_v10 = vsel %vm840_vm4, %v822_v62, %v804_v0 }
  0xdc   : > { %v766_v11 = vsel %vm687_vm2, %v744_v8, 0.0  ;;  %v882_v12 = vsel %vm803_vm5, %v859_v10, 0.0  ;;  %v925_v13 = vmul.f32 %v3011_v56, %v726_v7  ;;  %v2635_v15 = vpop.f32.mrf.mxu0  ;;  %v1028_v17 = vmul.f32 %v3013_v57, %v841_v9 }
  0xdd   : > { %v924_v16 = vmul.f32 %v3011_v56, %v766_v11  ;;  %v1029_v18 = vmul.f32 %v3013_v57, %v882_v12  ;;  %v708_v19 = vrot.slane %v654_v1, 7  ;;  %v823_v21 = vrot.slane %v654_v1, 1 }
  0xde   : > { %v993_v20 = vadd.f32 %v961_v2, %v925_v13  ;;  %v3045_v22 = vmul.f32 %v3004_v52, %v654_v1  ;;  %v653_v23 = vmax.f32 %v482_v6, 0.0  ;;  %v492_v24 = vpop.f32.mrf.mxu0  ;;  %v1133_v26 = vmul.f32 %v3008_v54, %v654_v1 }
  0xdf   : > { %v992_v25 = vadd.f32 %v960_v14, %v924_v16  ;;  %v3048_v27 = vmax.f32 %v2635_v15, 0.0  ;;  %v3050_v28 = vmax.f32 %v492_v24, 0.0 }
  0xe0   : > { %v1061_v29 = vadd.f32 %v1029_v18, %v993_v20  ;;  %v690_v30 = vrot.slane %v653_v23, 7  ;;  %v805_v31 = vrot.slane %v653_v23, 1  ;;  %v962_v32 = vmul.f32 %v3004_v52, %v653_v23  ;;  %v2638_v33 = vpop.f32.mrf.mxu0 }
  0xe1   : > { %v3053_v34 = vadd.f32 %v1028_v17, %v992_v25  ;;  %v1132_v35 = vmul.f32 %v3008_v54, %v653_v23  ;;  %v709_v36 = vrot.slane %v3048_v27, 7  ;;  %v824_v37 = vrot.slane %v3048_v27, 1 }
  0xe2   : > { %v727_v38 = vsel %vm725_vm3, %v690_v30, %v708_v19  ;;  %v745_v39 = vsel %vm725_vm3, %v708_v19, %v690_v30  ;;  %v3064_v40 = vsel %vm840_vm4, %v805_v31, %v823_v21  ;;  %v860_v42 = vsel %vm840_vm4, %v823_v21, %v805_v31  ;;  %v502_v43 = vpop.f32.mrf.mxu0 }
  0xe3   : > { %v768_v44 = vsel %vm687_vm2, %v745_v39, 0.0  ;;  %v3072_v45 = vsel %vm803_vm5, %v860_v42, 0.0  ;;  %v3075_v46 = vmul.f32 %v3011_v56, %v727_v38  ;;  %v1097_v47 = vmul.f32 %v3016_v59, %v727_v38 }
  0xe4   : > { %v926_v48 = vmul.f32 %v3011_v56, %v768_v44  ;;  %v1096_v50 = vmul.f32 %v3016_v59, %v768_v44  ;;  %v1201_v51 = vmul.f32 %v3021_v3, %v3072_v45  ;;  %v3084_v53 = vmul.f32 %v3004_v52, %v3048_v27  ;;  %v2641_v55 = vpop.f32.mrf.mxu0 }
  0xe5   : > { %v1165_v58 = vadd.f32 %v1133_v26, %v1097_v47  ;;  %v3088_v61 = vmul.f32 %v3008_v54, %v3048_v27  ;;  %v1337_v62 = vmul.f32 %v3018_v60, %v3048_v27  ;;  %v691_v63 = vrot.slane %v3050_v28, 7 }
  0xe6   : > { %v3093_v0 = vadd.f32 %v962_v32, %v926_v48  ;;  %v3095_v1 = vadd.f32 %v1132_v35, %v1096_v50  ;;  %v806_v2 = vrot.slane %v3050_v28, 1  ;;  %v3100_v6 = vmul.f32 %v3004_v52, %v3050_v28  ;;  %v512_v7 = vpop.f32.mrf.mxu0 }
  0xe7   : > { %v1233_v8 = vadd.f32 %v1201_v51, %v1165_v58  ;;  %v3106_v9 = vsel %vm725_vm3, %v691_v63, %v709_v36  ;;  %v3110_v10 = vmul.f32 %v3008_v54, %v3050_v28  ;;  %v3114_v11 = vmul.f32 %v3018_v60, %v3050_v28 }
  0xe8   : > { %v861_v12 = vsel %vm840_vm4, %v824_v37, %v806_v2  ;;  %v1301_v13 = vmul.f32 %v3023_v4, %v3106_v9  ;;  %v3122_v14 = vmax.f32 %v2638_v33, 0.0  ;;  %v3124_v15 = vmax.f32 %v502_v43, 0.0  ;;  %v2644_v16 = vpop.f32.mrf.mxu0 }
  0xe9   : > { %v3126_v17 = vadd.f32 %v1233_v8, %v1061_v29  ;;  %v3130_v18 = vsel %vm803_vm5, %v861_v12, 0.0  ;;  %v3132_v19 = vmax.f32 %v2641_v55, 0.0  ;;  %v3134_v20 = vmax.f32 %v512_v7, 0.0 }
  0xea   : > { %v1369_v21 = vadd.f32 %v1337_v62, %v1301_v13  ;;  %v1405_v23 = vmul.f32 %v3025_v5, %v3130_v18  ;;  %v522_v26 = vpop.f32.mrf.mxu0  ;;  %v3142_v28 = vmul.f32 %v3004_v52, %v3122_v14  ;;  %v3146_v29 = vmul.f32 %v3008_v54, %v3122_v14 }
  0xeb   : > { %v3150_v30 = vmul.f32 %v3018_v60, %v3122_v14  ;;  %v3156_v33 = vmul.f32 %v3004_v52, %v3124_v15  ;;  %v3160_v35 = vmul.f32 %v3008_v54, %v3124_v15  ;;  %v3164_v38 = vmul.f32 %v3018_v60, %v3124_v15 }
  0xec   : > { %v2647_v39 = vpop.f32.mrf.mxu0  ;;  %v3170_v44 = vmul.f32 %v3004_v52, %v3132_v19  ;;  %v3174_v47 = vmul.f32 %v3008_v54, %v3132_v19  ;;  %v3178_v48 = vmul.f32 %v3018_v60, %v3132_v19  ;;  %v3184_v55 = vmul.f32 %v3004_v52, %v3134_v20 }
  0xed   : > { %v3188_v62 = vmul.f32 %v3008_v54, %v3134_v20  ;;  %v3192_v7 = vmul.f32 %v3018_v60, %v3134_v20  ;;  %v3194_v8 = vmax.f32 %v2644_v16, 0.0  ;;  %v3196_v12 = vmax.f32 %v522_v26, 0.0 }
  0xee   : > { %4757 = vst [vmem:[#allocation2_spill] sm:$0xff] %v3170_v44  ;;  %4758 = vst [vmem:[#allocation3_spill] sm:$0xff] %v3184_v55  ;;  %v532_v58 = vpop.f32.mrf.mxu0  ;;  %v3198_v13 = vmax.f32 %v2647_v39, 0.0  ;;  %v746_v43 = vsel %vm725_vm3, %v709_v36, %v691_v63  ;;  %v3210_v42 = vsel %vm840_vm4, %v806_v2, %v824_v37  ;;  %v1200_v24 = vmul.f32 %v3021_v3, %v3064_v40 }
  0xef   : > { %v3200_v51 = vmax.f32 %v532_v58, 0.0  ;;  %v3216_v39 = vmul.f32 %v3004_v52, %v3194_v8  ;;  %v3220_v58 = vmul.f32 %v3008_v54, %v3194_v8  ;;  %v3224_v27 = vmul.f32 %v3018_v60, %v3194_v8 }
  0xf0   : > { %v2650_v50 = vpop.f32.mrf.mxu0  ;;  %v3230_v63 = vmul.f32 %v3004_v52, %v3196_v12  ;;  %v3234_v2 = vmul.f32 %v3008_v54, %v3196_v12  ;;  %v3238_v26 = vmul.f32 %v3018_v60, %v3196_v12  ;;  %v3244_v36 = vmul.f32 %v3004_v52, %v3198_v13 }
  0xf1   : > { %4759 = vst [vmem:[#allocation4_spill] sm:$0xff] %v3216_v39  ;;  %4760 = vst [vmem:[#allocation5_spill] sm:$0xff] %v3220_v58  ;;  %v3248_v37 = vmul.f32 %v3008_v54, %v3198_v13  ;;  %v3252_v25 = vmul.f32 %v3018_v60, %v3198_v13  ;;  %v3258_v32 = vmul.f32 %v3004_v52, %v3200_v51  ;;  %v4770_v58 = vrot.slane %v3124_v15, 7 }
  0xf2   : > { %4761 = vst [vmem:[#allocation6_spill] sm:$0xff] %v3230_v63  ;;  %4762 = vst [vmem:[#allocation7_spill] sm:$0xff] %v3234_v2  ;;  %v542_v31 = vpop.f32.mrf.mxu0  ;;  %v3262_v16 = vmul.f32 %v3008_v54, %v3200_v51  ;;  %v1404_v39 = vmul.f32 %v3025_v5, %v3210_v42  ;;  %v1437_v63 = vadd.f32 %v1405_v23, %v1369_v21 }
  0xf3   : > { %4763 = vst [vmem:[#allocation8_spill] sm:$0xff] %v3244_v36  ;;  %4764 = vst [vmem:[#allocation9_spill] sm:$0xff] %v3248_v37  ;;  %v3266_v36 = vmul.f32 %v3018_v60, %v3200_v51  ;;  %v3270_v37 = vsel %vm687_vm2, %v746_v43, 0.0  ;;  %v4771_v43 = vrot.slane %v3122_v14, 7 }
  0xf4   : > { %4765 = vst [vmem:[#allocation10_spill] sm:$0xff] %v3252_v25  ;;  %4766 = vst [vmem:[#allocation11_spill] sm:$0xff] %v3258_v32  ;;  %v3276_v32 = vmax.f32 %v2650_v50, 0.0  ;;  %v3280_v25 = vmax.f32 %v542_v31, 0.0 }
  0xf5   : > { %4767 = vst [vmem:[#allocation12_spill] sm:$0xff] %v3262_v16  ;;  %4768 = vst [vmem:[#allocation13_spill] sm:$0xff] %v3266_v36  ;;  %v1300_v16 = vmul.f32 %v3023_v4, %v3270_v37  ;;  %v747_v44 = vsel %vm725_vm3, %v4771_v43, %v4770_v58  ;;  %v1232_v36 = vadd.f32 %v1200_v24, %v3095_v1 }
  0xf6   : > { %4769 = vst [vmem:[#allocation14_spill] sm:$0xff] %v3276_v32  ;;  %v3293_v55 = vmul.f32 %v3004_v52, %v3276_v32  ;;  %v3298_v23 = vmul.f32 %v3008_v54, %v3276_v32  ;;  %v3302_v31 = vmul.f32 %v3018_v60, %v3276_v32  ;;  %v1469_v1 = vadd.f32 %v1437_v63, %v3126_v17 }
  0xf7   : > { %v1368_v21 = vadd.f32 %v3114_v11, %v1300_v16  ;;  %v1264_v24 = vadd.f32 %v1232_v36, %v3053_v34  ;;  %v3310_v50 = vmul.f32 %v3008_v54, %v3280_v25  ;;  %v2653_v11 = vpop.f32.mrf.mxu0  ;;  %v3318_v17 = vsel %vm687_vm2, %v747_v44, 0.0 }
  0xf8   : > { %4772 = vst [vmem:[#allocation15_spill] sm:$0xff] %v3293_v55  ;;  %4773 = vst [vmem:[#allocation16_spill] sm:$0xff] %v3298_v23  ;;  %v1501_v2 = vmax.f32 %v1469_v1, 0.0  ;;  %v3314_v55 = vmul.f32 %v3018_v60, %v3280_v25  ;;  %v4777_v34 = vrot.slane %v3122_v14, 1  ;;  %v4778_v36 = vrot.slane %v3124_v15, 1 }
  0xf9   : > { %4774 = vst [vmem:[#allocation17_spill] sm:$0xff] %v3302_v31  ;;  %4775 = vst [vmem:[#allocation18_spill] sm:$0xff] %v3310_v50  ;;  %v1436_v16 = vadd.f32 %v1404_v39, %v1368_v21  ;;  %v1030_v39 = vmul.f32 %v3013_v57, %v3064_v40  ;;  %v1098_v21 = vmul.f32 %v3016_v59, %v3270_v37  ;;  %v3338_v23 = vmax.f32 %v2653_v11, 0.0 }
  0xfa   : > { %4776 = vst [vmem:[#allocation19_spill] sm:$0xff] %v3314_v55  ;;  %v3326_v63 = vsel %vm840_vm4, %v4778_v36, %v4777_v34  ;;  %v1202_v1 = vmul.f32 %v3021_v3, %v3210_v42  ;;  %v1302_v44 = vmul.f32 %v3023_v4, %v3318_v17  ;;  %v4779_v40 = vrot.slane %v3122_v14, 7 }
  0xfb   : > { %v1468_v43 = vadd.f32 %v1436_v16, %v1264_v24  ;;  %v1406_v58 = vmul.f32 %v3025_v5, %v3326_v63  ;;  %v1062_v34 = vadd.f32 %v1030_v39, %v3093_v0  ;;  %v1166_v36 = vadd.f32 %v3110_v10, %v1098_v21 }
  0xfc   : > { %v4780_v50 = vrot.slane %v3124_v15, 7  ;;  %v4781_v24 = vrot.slane %v3124_v15, 1  ;;  %v4782_v16 = vrot.slane %v3122_v14, 1  ;;  %v1370_v0 = vadd.f32 %v3164_v38, %v1302_v44 }
  0xfd   : > { %v1500_v55 = vmax.f32 %v1468_v43, 0.0  ;;  %v1234_v21 = vadd.f32 %v1202_v1, %v1166_v36  ;;  %v3361_v32 = vmul.f32 %v3004_v52, %v3338_v23  ;;  %v3365_v15 = vmul.f32 %v3008_v54, %v3338_v23 }
  0xfe   : > { %v3348_v31 = vsel %vm725_vm3, %v4780_v50, %v4779_v40  ;;  %v862_v11 = vsel %vm840_vm4, %v4782_v16, %v4781_v24  ;;  %v3369_v14 = vmul.f32 %v3018_v60, %v3338_v23  ;;  %v552_v50 = vpop.f32.mrf.mxu0  ;;  %v1438_v38 = vadd.f32 %v1406_v58, %v1370_v0 }
  0xff   : > { %2687 = vmatprep.mubr.msk.f32.mxu0 %vm1535_vm6, %v1500_v55  ;;  %v3374_v43 = vsel %vm803_vm5, %v862_v11, 0.0  ;;  %v995_v1 = vadd.f32 %v3045_v22, %v3075_v46  ;;  %v1031_v44 = vmul.f32 %v3013_v57, %v3072_v45  ;;  %v1266_v36 = vadd.f32 %v1234_v21, %v1062_v34 }
 0x100   : > { %2688 = vmatmul.mubr.msk.f32.vlgmr.msra.gmra.mxu0 %vm1535_vm6, %v1501_v2  ;;  %v1099_v40 = vmul.f32 %v3016_v59, %v3106_v9  ;;  %v1203_v55 = vmul.f32 %v3021_v3, %v3130_v18  ;;  %v1303_v58 = vmul.f32 %v3023_v4, %v3348_v31  ;;  %v1407_v16 = vmul.f32 %v3025_v5, %v3374_v43 }
 0x101   : > { %v1063_v24 = vadd.f32 %v1031_v44, %v995_v1  ;;  %v3389_v22 = vmax.f32 %v552_v50, 0.0  ;;  %v4783_v45 = vrot.slane %v3134_v20, 7  ;;  %v4784_v46 = vrot.slane %v3132_v19, 7 }
 0x102   : > { %v1470_v34 = vadd.f32 %v1438_v38, %v1266_v36  ;;  %v1167_v11 = vadd.f32 %v3088_v61, %v1099_v40  ;;  %v1371_v0 = vadd.f32 %v3150_v30, %v1303_v58  ;;  %v2656_v38 = vpop.f32.mrf.mxu0  ;;  %v4785_v40 = vrot.slane %v3132_v19, 1 }
 0x103   : > { %v748_v2 = vsel %vm725_vm3, %v4784_v46, %v4783_v45  ;;  %v3407_v44 = vmul.f32 %v3004_v52, %v3389_v22  ;;  %v3411_v45 = vmul.f32 %v3018_v60, %v3389_v22  ;;  %v4786_v58 = vrot.slane %v3134_v20, 1 }
 0x104   : > { %v3401_v21 = vsel %vm687_vm2, %v748_v2, 0.0  ;;  %v1502_v61 = vmax.f32 %v1470_v34, 0.0  ;;  %v1235_v36 = vadd.f32 %v1203_v55, %v1167_v11  ;;  %v1439_v30 = vadd.f32 %v1407_v16, %v1371_v0 }
 0x105   : > { %v3419_v46 = vsel %vm840_vm4, %v4786_v58, %v4785_v40  ;;  %v928_v2 = vmul.f32 %v3011_v56, %v3270_v37  ;;  %v1032_v50 = vmul.f32 %v3013_v57, %v3210_v42  ;;  %v1100_v39 = vmul.f32 %v3016_v59, %v3318_v17 }
 0x106   : > { %v1204_v55 = vmul.f32 %v3021_v3, %v3326_v63  ;;  %2690 = vmatprep.mubr.msk.f32.mxu0 %vm1535_vm6, %v1502_v61  ;;  %v1267_v16 = vadd.f32 %v1235_v36, %v1063_v24  ;;  %v1304_v34 = vmul.f32 %v3023_v4, %v3401_v21  ;;  %v1408_v11 = vmul.f32 %v3025_v5, %v3419_v46 }
 0x107   : > { %v3434_v0 = vmax.f32 %v2656_v38, 0.0  ;;  %v996_v37 = vadd.f32 %v3100_v6, %v928_v2  ;;  %v1168_v42 = vadd.f32 %v3160_v35, %v1100_v39  ;;  %v4787_v40 = vrot.slane %v3132_v19, 7 }
 0x108   : > { %v4788_v58 = vrot.slane %v3134_v20, 7  ;;  %v4789_v24 = vrot.slane %v3134_v20, 1  ;;  %v4790_v36 = vrot.slane %v3132_v19, 1  ;;  %v1471_v10 = vadd.f32 %v1439_v30, %v1267_v16  ;;  %v562_v20 = vpop.f32.mrf.mxu0 }
 0x109   : > { %v1372_v6 = vadd.f32 %v3192_v7, %v1304_v34  ;;  %v3456_v39 = vmul.f32 %v3004_v52, %v3434_v0  ;;  %v1064_v2 = vadd.f32 %v1032_v50, %v996_v37  ;;  %v1236_v1 = vadd.f32 %v1204_v55, %v1168_v42 }
 0x10a   : > { %v3444_v61 = vsel %vm725_vm3, %v4788_v58, %v4787_v40  ;;  %v863_v38 = vsel %vm840_vm4, %v4790_v36, %v4789_v24  ;;  %v3460_v40 = vmul.f32 %v3008_v54, %v3434_v0  ;;  %v3464_v19 = vmul.f32 %v3018_v60, %v3434_v0 }
 0x10b   : > { %4791 = vst [vmem:[#allocation20_spill] sm:$0xff] %v3456_v39  ;;  %v1503_v30 = vmax.f32 %v1471_v10, 0.0  ;;  %v1440_v16 = vadd.f32 %v1408_v11, %v1372_v6  ;;  %v3468_v7 = vsel %vm803_vm5, %v863_v38, 0.0  ;;  %v929_v34 = vmul.f32 %v3011_v56, %v3106_v9 }
 0x10c   : > { %v1268_v50 = vadd.f32 %v1236_v1, %v1064_v2  ;;  %v1033_v55 = vmul.f32 %v3013_v57, %v3130_v18  ;;  %v1101_v37 = vmul.f32 %v3016_v59, %v3348_v31  ;;  %v1205_v42 = vmul.f32 %v3021_v3, %v3374_v43 }
 0x10d   : > { %2691 = vmatmul.mubr.msk.f32.gmra.mxu0 %vm1535_vm6, %v1503_v30  ;;  %v997_v10 = vadd.f32 %v3084_v53, %v929_v34  ;;  %v1305_v11 = vmul.f32 %v3023_v4, %v3444_v61  ;;  %v1409_v9 = vmul.f32 %v3025_v5, %v3468_v7  ;;  %v3484_v1 = vmax.f32 %v562_v20, 0.0 }
 0x10e   : > { %v1472_v58 = vadd.f32 %v1440_v16, %v1268_v50  ;;  %v1169_v18 = vadd.f32 %v3146_v29, %v1101_v37  ;;  %v4792_v24 = vrot.slane %v3196_v12, 7  ;;  %v4793_v36 = vrot.slane %v3194_v8, 7 }
 0x10f   : > { %v4794_v53 = vrot.slane %v3194_v8, 1  ;;  %v4795_v6 = vrot.slane %v3196_v12, 1  ;;  %v1065_v20 = vadd.f32 %v1033_v55, %v997_v10  ;;  %v1373_v30 = vadd.f32 %v3178_v48, %v1305_v11 }
 0x110   : > { %v749_v38 = vsel %vm725_vm3, %v4793_v36, %v4792_v24  ;;  %v3505_v16 = vmul.f32 %v3004_v52, %v3484_v1  ;;  %v1504_v34 = vmax.f32 %v1472_v58, 0.0  ;;  %v1237_v50 = vadd.f32 %v1205_v42, %v1169_v18  ;;  %v2659_v36 = vpop.f32.mrf.mxu0 }
 0x111   : > { %v3499_v2 = vsel %vm840_vm4, %v4795_v6, %v4794_v53  ;;  %v3509_v37 = vmul.f32 %v3008_v54, %v3484_v1  ;;  %v3513_v24 = vsel %vm687_vm2, %v749_v38, 0.0  ;;  %v1441_v55 = vadd.f32 %v1409_v9, %v1373_v30 }
 0x112   : > { %v930_v48 = vmul.f32 %v3011_v56, %v3318_v17  ;;  %v1034_v10 = vmul.f32 %v3013_v57, %v3326_v63  ;;  %v1102_v11 = vmul.f32 %v3016_v59, %v3401_v21  ;;  %2693 = vmatprep.mubr.msk.f32.mxu0 %vm1535_vm6, %v1504_v34  ;;  %v1269_v42 = vadd.f32 %v1237_v50, %v1065_v20 }
 0x113   : > { %v1206_v58 = vmul.f32 %v3021_v3, %v3419_v46  ;;  %v1306_v18 = vmul.f32 %v3023_v4, %v3513_v24  ;;  %v1410_v9 = vmul.f32 %v3025_v5, %v3499_v2  ;;  %v3530_v63 = vmax.f32 %v2659_v36, 0.0 }
 0x114   : > { %v998_v17 = vadd.f32 %v3156_v33, %v930_v48  ;;  %v1170_v38 = vadd.f32 %v3188_v62, %v1102_v11  ;;  %v4796_v53 = vrot.slane %v3194_v8, 7  ;;  %v4797_v6 = vrot.slane %v3196_v12, 7 }
 0x115   : > { %v1473_v30 = vadd.f32 %v1441_v55, %v1269_v42  ;;  %v1374_v34 = vadd.f32 %v3238_v26, %v1306_v18  ;;  %v4798_v50 = vrot.slane %v3196_v12, 1  ;;  %v4799_v35 = vrot.slane %v3194_v8, 1  ;;  %v572_v12 = vpop.f32.mrf.mxu0 }
 0x116   : > { %v3538_v20 = vsel %vm725_vm3, %v4797_v6, %v4796_v53  ;;  %v931_v62 = vmul.f32 %v3011_v56, %v3348_v31  ;;  %v1066_v36 = vadd.f32 %v1034_v10, %v998_v17  ;;  %v1238_v48 = vadd.f32 %v1206_v58, %v1170_v38 }
 0x117   : > { %v864_v33 = vsel %vm840_vm4, %v4799_v35, %v4798_v50  ;;  %v1505_v6 = vmax.f32 %v1473_v30, 0.0  ;;  %v1442_v55 = vadd.f32 %v1410_v9, %v1374_v34  ;;  %v3553_v26 = vmul.f32 %v3004_v52, %v3530_v63 }
 0x118   : > { %v3557_v8 = vmul.f32 %v3008_v54, %v3530_v63  ;;  %v1270_v35 = vadd.f32 %v1238_v48, %v1066_v36  ;;  %v3561_v31 = vmul.f32 %v3018_v60, %v3530_v63  ;;  %v3565_v10 = vsel %vm803_vm5, %v864_v33, 0.0 }
 0x119   : > { %4800 = vst [vmem:[#allocation21_spill] sm:$0xff] %v3553_v26  ;;  %v999_v42 = vadd.f32 %v3142_v28, %v931_v62  ;;  %2694 = vmatmul.mubr.msk.f32.gmra.mxu0 %vm1535_vm6, %v1505_v6  ;;  %v1035_v58 = vmul.f32 %v3013_v57, %v3374_v43  ;;  %v1103_v18 = vmul.f32 %v3016_v59, %v3444_v61  ;;  %v3579_v34 = vmax.f32 %v572_v12, 0.0 }
 0x11a   : > { %4801 = vst [vmem:[#allocation22_spill] sm:$0xff] %v3557_v8  ;;  %v1207_v9 = vmul.f32 %v3021_v3, %v3468_v7  ;;  %v1307_v17 = vmul.f32 %v3023_v4, %v3538_v20  ;;  %v1474_v38 = vadd.f32 %v1442_v55, %v1270_v35  ;;  %v1411_v30 = vmul.f32 %v3025_v5, %v3565_v10  ;;  %v4811_v55 = vld [vmem:[#allocation13_spill] sm:$0xff] }
 0x11b   : > { %v4802_v28 = vrot.slane %v3200_v51, 7  ;;  %v4803_v50 = vrot.slane %v3198_v13, 7  ;;  %v1067_v33 = vadd.f32 %v1035_v58, %v999_v42  ;;  %v1171_v62 = vadd.f32 %v3174_v47, %v1103_v18  ;;  %v2662_v42 = vpop.f32.mrf.mxu0 }
 0x11c   : > { %v1375_v36 = vadd.f32 %v3224_v27, %v1307_v17  ;;  %v1506_v6 = vmax.f32 %v1474_v38, 0.0  ;;  %v3597_v35 = vmul.f32 %v3004_v52, %v3579_v34  ;;  %v3601_v47 = vmul.f32 %v3008_v54, %v3579_v34 }
 0x11d   : > { %v750_v43 = vsel %vm725_vm3, %v4803_v50, %v4802_v28  ;;  %v1239_v53 = vadd.f32 %v1207_v9, %v1171_v62  ;;  %v3605_v27 = vmul.f32 %v3018_v60, %v3579_v34  ;;  %v4805_v58 = vrot.slane %v3198_v13, 1 }
 0x11e   : > { %v3591_v48 = vsel %vm687_vm2, %v750_v43, 0.0  ;;  %4804 = vst [vmem:[#allocation23_spill] sm:$0xff] %v3597_v35  ;;  %v1443_v28 = vadd.f32 %v1411_v30, %v1375_v36  ;;  %2696 = vmatprep.mubr.msk.f32.mxu0 %vm1535_vm6, %v1506_v6  ;;  %v4806_v18 = vrot.slane %v3200_v51, 1  ;;  %v932_v9 = vmul.f32 %v3011_v56, %v3401_v21  ;;  %v4807_v6 = vld [vmem:[#allocation3_spill] sm:$0xff] }
 0x11f   : > { %v1036_v38 = vmul.f32 %v3013_v57, %v3419_v46  ;;  %v1104_v30 = vmul.f32 %v3016_v59, %v3513_v24  ;;  %v1271_v50 = vadd.f32 %v1239_v53, %v1067_v33  ;;  %v1208_v43 = vmul.f32 %v3021_v3, %v3499_v2 }
 0x120   : > { %v3614_v17 = vsel %vm840_vm4, %v4806_v18, %v4805_v58  ;;  %v1308_v62 = vmul.f32 %v3023_v4, %v3591_v48  ;;  %v1000_v58 = vadd.f32 %v4807_v6, %v932_v9  ;;  %v4808_v18 = vld [vmem:[#allocation7_spill] sm:$0xff]  ;;  %v3630_v12 = vmax.f32 %v2662_v42, 0.0 }
 0x121   : > { %v1412_v36 = vmul.f32 %v3025_v5, %v3614_v17  ;;  %v1172_v21 = vadd.f32 %v4808_v18, %v1104_v30  ;;  %v4809_v46 = vrot.slane %v3198_v13, 7  ;;  %v4810_v11 = vrot.slane %v3200_v51, 7 }
 0x122   : > { %v1475_v33 = vadd.f32 %v1443_v28, %v1271_v50  ;;  %v1376_v29 = vadd.f32 %v4811_v55, %v1308_v62  ;;  %v4812_v26 = vrot.slane %v3200_v51, 1  ;;  %v4813_v35 = vrot.slane %v3198_v13, 1  ;;  %v582_v13 = vpop.f32.mrf.mxu0 }
 0x123   : > { %v3638_v53 = vsel %vm725_vm3, %v4810_v11, %v4809_v46  ;;  %v933_v42 = vmul.f32 %v3011_v56, %v3444_v61  ;;  %v1068_v30 = vadd.f32 %v1036_v38, %v1000_v58  ;;  %v1240_v6 = vadd.f32 %v1208_v43, %v1172_v21  ;;  %v4817_v38 = vld [vmem:[#allocation2_spill] sm:$0xff] }
 0x124   : > { %v865_v9 = vsel %vm840_vm4, %v4813_v35, %v4812_v26  ;;  %v1507_v46 = vmax.f32 %v1475_v33, 0.0  ;;  %v1444_v28 = vadd.f32 %v1412_v36, %v1376_v29  ;;  %v3653_v55 = vmul.f32 %v3004_v52, %v3630_v12  ;;  %v4822_v11 = vld [vmem:[#allocation10_spill] sm:$0xff] }
 0x125   : > { %v3657_v51 = vmul.f32 %v3008_v54, %v3630_v12  ;;  %v1272_v26 = vadd.f32 %v1240_v6, %v1068_v30  ;;  %v3661_v61 = vmul.f32 %v3018_v60, %v3630_v12  ;;  %v3665_v35 = vsel %vm803_vm5, %v865_v9, 0.0 }
 0x126   : > { %4814 = vst [vmem:[#allocation3_spill] sm:$0xff] %v3653_v55  ;;  %v1001_v29 = vadd.f32 %v4817_v38, %v933_v42  ;;  %2697 = vmatmul.mubr.msk.f32.gmra.mxu0 %vm1535_vm6, %v1507_v46  ;;  %v1037_v50 = vmul.f32 %v3013_v57, %v3468_v7  ;;  %v1105_v43 = vmul.f32 %v3016_v59, %v3538_v20  ;;  %v3679_v33 = vmax.f32 %v582_v13, 0.0  ;;  %v4819_v42 = vld [vmem:[#allocation14_spill] sm:$0xff]  ;;  %v4821_v46 = vld [vmem:[#allocation5_spill] sm:$0xff] }
 0x127   : > { %4815 = vst [vmem:[#allocation7_spill] sm:$0xff] %v3657_v51  ;;  %4816 = vst [vmem:[#allocation13_spill] sm:$0xff] %v3661_v61  ;;  %v1209_v62 = vmul.f32 %v3021_v3, %v3565_v10  ;;  %v1309_v36 = vmul.f32 %v3023_v4, %v3638_v53  ;;  %v1476_v58 = vadd.f32 %v1444_v28, %v1272_v26  ;;  %v4818_v9 = vrot.slane %v3280_v25, 7 }
 0x128   : > { %v1413_v21 = vmul.f32 %v3025_v5, %v3665_v35  ;;  %v4820_v30 = vrot.slane %v4819_v42, 7  ;;  %v1069_v6 = vadd.f32 %v1037_v50, %v1001_v29  ;;  %v1173_v38 = vadd.f32 %v4821_v46, %v1105_v43  ;;  %v2665_v50 = vpop.f32.mrf.mxu0 }
 0x129   : > { %v1377_v18 = vadd.f32 %v4822_v11, %v1309_v36  ;;  %v1508_v26 = vmax.f32 %v1476_v58, 0.0  ;;  %v3697_v51 = vmul.f32 %v3004_v52, %v3679_v33  ;;  %v3701_v29 = vmul.f32 %v3008_v54, %v3679_v33 }
 0x12a   : > { %v751_v7 = vsel %vm725_vm3, %v4820_v30, %v4818_v9  ;;  %v1241_v61 = vadd.f32 %v1209_v62, %v1173_v38  ;;  %v3705_v11 = vmul.f32 %v3018_v60, %v3679_v33  ;;  %v4825_v43 = vrot.slane %v4819_v42, 1 }
 0x12b   : > { %v3691_v28 = vsel %vm687_vm2, %v751_v7, 0.0  ;;  %4823 = vst [vmem:[#allocation2_spill] sm:$0xff] %v3697_v51  ;;  %v1445_v9 = vadd.f32 %v1413_v21, %v1377_v18  ;;  %4824 = vst [vmem:[#allocation14_spill] sm:$0xff] %v3701_v29  ;;  %2699 = vmatprep.mubr.msk.f32.mxu0 %vm1535_vm6, %v1508_v26  ;;  %v4826_v36 = vrot.slane %v3280_v25, 1  ;;  %v934_v18 = vmul.f32 %v3011_v56, %v3513_v24  ;;  %v4827_v26 = vld [vmem:[#allocation6_spill] sm:$0xff]  ;;  %v4831_v51 = vld [vmem:[#allocation19_spill] sm:$0xff] }
 0x12c   : > { %v1038_v62 = vmul.f32 %v3013_v57, %v3499_v2  ;;  %v1106_v21 = vmul.f32 %v3016_v59, %v3591_v48  ;;  %v1273_v30 = vadd.f32 %v1241_v61, %v1069_v6  ;;  %v1210_v7 = vmul.f32 %v3021_v3, %v3614_v17 }
 0x12d   : > { %v3714_v58 = vsel %vm840_vm4, %v4826_v36, %v4825_v43  ;;  %v1310_v46 = vmul.f32 %v3023_v4, %v3691_v28  ;;  %v1002_v43 = vadd.f32 %v4827_v26, %v934_v18  ;;  %v4828_v36 = vld [vmem:[#allocation12_spill] sm:$0xff]  ;;  %v3730_v55 = vmax.f32 %v2665_v50, 0.0 }
 0x12e   : > { %v1414_v38 = vmul.f32 %v3025_v5, %v3714_v58  ;;  %v1174_v24 = vadd.f32 %v4828_v36, %v1106_v21  ;;  %v4829_v2 = vrot.slane %v4819_v42, 7  ;;  %v4830_v13 = vrot.slane %v3280_v25, 7 }
 0x12f   : > { %v1477_v6 = vadd.f32 %v1445_v9, %v1273_v30  ;;  %v1378_v29 = vadd.f32 %v4831_v51, %v1310_v46  ;;  %v4832_v8 = vrot.slane %v3280_v25, 1  ;;  %v4833_v39 = vrot.slane %v4819_v42, 1  ;;  %v4837_v30 = vld [vmem:[#allocation4_spill] sm:$0xff] }
 0x130   : > { %v3738_v61 = vsel %vm725_vm3, %v4830_v13, %v4829_v2  ;;  %v935_v50 = vmul.f32 %v3011_v56, %v3538_v20  ;;  %v1070_v21 = vadd.f32 %v1038_v62, %v1002_v43  ;;  %v1242_v26 = vadd.f32 %v1210_v7, %v1174_v24  ;;  %v4841_v13 = vld [vmem:[#allocation17_spill] sm:$0xff] }
 0x131   : > { %v866_v18 = vsel %vm840_vm4, %v4833_v39, %v4832_v8  ;;  %v1509_v2 = vmax.f32 %v1477_v6, 0.0  ;;  %v1446_v9 = vadd.f32 %v1414_v38, %v1378_v29  ;;  %v3753_v51 = vmul.f32 %v3004_v52, %v3730_v55  ;;  %v592_v39 = vpop.f32.mrf.mxu0 }
 0x132   : > { %v3757_v42 = vmul.f32 %v3008_v54, %v3730_v55  ;;  %v1274_v8 = vadd.f32 %v1242_v26, %v1070_v21  ;;  %v3761_v20 = vmul.f32 %v3018_v60, %v3730_v55  ;;  %v3765_v62 = vsel %vm803_vm5, %v866_v18, 0.0 }
 0x133   : > { %4834 = vst [vmem:[#allocation5_spill] sm:$0xff] %v3753_v51  ;;  %v1003_v29 = vadd.f32 %v4837_v30, %v935_v50  ;;  %2700 = vmatmul.mubr.msk.f32.gmra.mxu0 %vm1535_vm6, %v1509_v2  ;;  %v1039_v7 = vmul.f32 %v3013_v57, %v3565_v10  ;;  %v1107_v46 = vmul.f32 %v3016_v59, %v3638_v53  ;;  %v3779_v18 = vmax.f32 %v592_v39, 0.0  ;;  %v4840_v2 = vld [vmem:[#allocation9_spill] sm:$0xff] }
 0x134   : > { %4835 = vst [vmem:[#allocation10_spill] sm:$0xff] %v3757_v42  ;;  %4836 = vst [vmem:[#allocation6_spill] sm:$0xff] %v3761_v20  ;;  %v1211_v38 = vmul.f32 %v3021_v3, %v3665_v35  ;;  %v1311_v43 = vmul.f32 %v3023_v4, %v3738_v61  ;;  %v1478_v24 = vadd.f32 %v1446_v9, %v1274_v8  ;;  %v4838_v50 = vrot.slane %v3389_v22, 7 }
 0x135   : > { %v1415_v6 = vmul.f32 %v3025_v5, %v3765_v62  ;;  %v4839_v21 = vrot.slane %v3338_v23, 7  ;;  %v1071_v26 = vadd.f32 %v1039_v7, %v1003_v29  ;;  %v1175_v30 = vadd.f32 %v4840_v2, %v1107_v46  ;;  %v2668_v7 = vpop.f32.mrf.mxu0 }
 0x136   : > { %v1379_v36 = vadd.f32 %v4841_v13, %v1311_v43  ;;  %v1510_v8 = vmax.f32 %v1478_v24, 0.0  ;;  %v3797_v42 = vmul.f32 %v3004_v52, %v3779_v18  ;;  %v3801_v29 = vmul.f32 %v3008_v54, %v3779_v18 }
 0x137   : > { %v752_v10 = vsel %vm725_vm3, %v4839_v21, %v4838_v50  ;;  %v1243_v20 = vadd.f32 %v1211_v38, %v1175_v30  ;;  %v3805_v13 = vmul.f32 %v3018_v60, %v3779_v18  ;;  %v4845_v46 = vrot.slane %v3338_v23, 1 }
 0x138   : > { %v3791_v9 = vsel %vm687_vm2, %v752_v10, 0.0  ;;  %4842 = vst [vmem:[#allocation12_spill] sm:$0xff] %v3797_v42  ;;  %v1447_v50 = vadd.f32 %v1415_v6, %v1379_v36  ;;  %4843 = vst [vmem:[#allocation19_spill] sm:$0xff] %v3801_v29  ;;  %2702 = vmatprep.mubr.msk.f32.mxu0 %vm1535_vm6, %v1510_v8  ;;  %v4846_v43 = vrot.slane %v3389_v22, 1  ;;  %v936_v36 = vmul.f32 %v3011_v56, %v3591_v48  ;;  %v4847_v8 = vld [vmem:[#allocation11_spill] sm:$0xff] }
 0x139   : > { %4844 = vst [vmem:[#allocation4_spill] sm:$0xff] %v3805_v13  ;;  %v1040_v38 = vmul.f32 %v3013_v57, %v3614_v17  ;;  %v1108_v6 = vmul.f32 %v3016_v59, %v3691_v28  ;;  %v1275_v21 = vadd.f32 %v1243_v20, %v1071_v26  ;;  %v1212_v10 = vmul.f32 %v3021_v3, %v3714_v58 }
 0x13a   : > { %v3814_v24 = vsel %vm840_vm4, %v4846_v43, %v4845_v46  ;;  %v1312_v2 = vmul.f32 %v3023_v4, %v3791_v9  ;;  %v1004_v46 = vadd.f32 %v4847_v8, %v936_v36  ;;  %v4848_v43 = vld [vmem:[#allocation18_spill] sm:$0xff]  ;;  %v3830_v51 = vmax.f32 %v2668_v7, 0.0 }
 0x13b   : > { %v1416_v30 = vmul.f32 %v3025_v5, %v3814_v24  ;;  %v1176_v48 = vadd.f32 %v4848_v43, %v1108_v6  ;;  %v4849_v17 = vrot.slane %v3338_v23, 7  ;;  %v4850_v39 = vrot.slane %v3389_v22, 7 }
 0x13c   : > { %v1479_v26 = vadd.f32 %v1447_v50, %v1275_v21  ;;  %v1380_v42 = vadd.f32 %v3411_v45, %v1312_v2  ;;  %v4851_v29 = vrot.slane %v3389_v22, 1  ;;  %v4852_v13 = vrot.slane %v3338_v23, 1  ;;  %v4856_v21 = vld [vmem:[#allocation8_spill] sm:$0xff] }
 0x13d   : > { %v3838_v20 = vsel %vm725_vm3, %v4850_v39, %v4849_v17  ;;  %v937_v7 = vmul.f32 %v3011_v56, %v3638_v53  ;;  %v1072_v6 = vadd.f32 %v1040_v38, %v1004_v46  ;;  %v1244_v8 = vadd.f32 %v1212_v10, %v1176_v48 }
 0x13e   : > { %v867_v36 = vsel %vm840_vm4, %v4852_v13, %v4851_v29  ;;  %v1511_v17 = vmax.f32 %v1479_v26, 0.0  ;;  %v1448_v50 = vadd.f32 %v1416_v30, %v1380_v42  ;;  %v3853_v45 = vmul.f32 %v3004_v52, %v3830_v51  ;;  %v602_v29 = vpop.f32.mrf.mxu0 }
 0x13f   : > { %v3857_v23 = vmul.f32 %v3008_v54, %v3830_v51  ;;  %v1276_v13 = vadd.f32 %v1244_v8, %v1072_v6  ;;  %v3861_v53 = vmul.f32 %v3018_v60, %v3830_v51  ;;  %v3865_v38 = vsel %vm803_vm5, %v867_v36, 0.0 }
 0x140   : > { %4853 = vst [vmem:[#allocation9_spill] sm:$0xff] %v3853_v45  ;;  %v1005_v42 = vadd.f32 %v4856_v21, %v937_v7  ;;  %2703 = vmatmul.mubr.msk.f32.gmra.mxu0 %vm1535_vm6, %v1511_v17  ;;  %v1041_v10 = vmul.f32 %v3013_v57, %v3665_v35  ;;  %v1109_v2 = vmul.f32 %v3016_v59, %v3738_v61  ;;  %v3879_v36 = vmax.f32 %v602_v29, 0.0  ;;  %v4859_v17 = vld [vmem:[#allocation16_spill] sm:$0xff] }
 0x141   : > { %4854 = vst [vmem:[#allocation17_spill] sm:$0xff] %v3857_v23  ;;  %4855 = vst [vmem:[#allocation11_spill] sm:$0xff] %v3861_v53  ;;  %v1213_v30 = vmul.f32 %v3021_v3, %v3765_v62  ;;  %v1313_v46 = vmul.f32 %v3023_v4, %v3838_v20  ;;  %v1480_v48 = vadd.f32 %v1448_v50, %v1276_v13  ;;  %v4857_v7 = vrot.slane %v3484_v1, 7 }
 0x142   : > { %v1417_v26 = vmul.f32 %v3025_v5, %v3865_v38  ;;  %v4858_v6 = vrot.slane %v3434_v0, 7  ;;  %v1073_v8 = vadd.f32 %v1041_v10, %v1005_v42  ;;  %v1177_v21 = vadd.f32 %v4859_v17, %v1109_v2 }
 0x143   : > { %v1381_v39 = vadd.f32 %v3369_v14, %v1313_v46  ;;  %v1512_v13 = vmax.f32 %v1480_v48, 0.0  ;;  %v3895_v45 = vmul.f32 %v3004_v52, %v3879_v36  ;;  %v3899_v42 = vmul.f32 %v3008_v54, %v3879_v36 }
 0x144   : > { %v753_v35 = vsel %vm725_vm3, %v4858_v6, %v4857_v7  ;;  %v1245_v23 = vadd.f32 %v1213_v30, %v1177_v21  ;;  %v3903_v14 = vmul.f32 %v3018_v60, %v3879_v36  ;;  %v813_v10 = vrot.slane %v3484_v1, 1 }
 0x145   : > { %v784_v50 = vsel %vm687_vm2, %v753_v35, 0.0  ;;  %4860 = vst [vmem:[#allocation18_spill] sm:$0xff] %v3895_v45  ;;  %v1449_v53 = vadd.f32 %v1417_v26, %v1381_v39  ;;  %4861 = vst [vmem:[#allocation8_spill] sm:$0xff] %v3899_v42  ;;  %2705 = vmatprep.mubr.msk.f32.mxu0 %vm1535_vm6, %v1512_v13  ;;  %v831_v2 = vrot.slane %v3434_v0, 1  ;;  %v938_v46 = vmul.f32 %v3011_v56, %v3691_v28 }
 0x146   : > { %4862 = vst [vmem:[#allocation16_spill] sm:$0xff] %v3903_v14  ;;  %v3911_v30 = vmul.f32 %v3011_v56, %v784_v50  ;;  %v1277_v39 = vadd.f32 %v1245_v23, %v1073_v8  ;;  %v974_v48 = vmul.f32 %v3004_v52, %v3280_v25  ;;  %v1042_v26 = vmul.f32 %v3013_v57, %v3714_v58  ;;  %v2671_v8 = vpop.f32.mrf.mxu0 }
 0x147   : > { %v1110_v7 = vmul.f32 %v3016_v59, %v3791_v9  ;;  %v850_v6 = vsel %vm840_vm4, %v813_v10, %v831_v2  ;;  %v1112_v35 = vmul.f32 %v3016_v59, %v784_v50  ;;  %v1146_v28 = vmul.f32 %v3008_v54, %v3389_v22 }
 0x148   : > { %v1214_v23 = vmul.f32 %v3021_v3, %v3814_v24  ;;  %v1481_v17 = vadd.f32 %v1449_v53, %v1277_v39  ;;  %v1006_v25 = vadd.f32 %v974_v48, %v938_v46  ;;  %v3927_v21 = vmul.f32 %v3013_v57, %v850_v6 }
 0x149   : > { %v1216_v58 = vmul.f32 %v3021_v3, %v850_v6  ;;  %v1178_v13 = vadd.f32 %v1146_v28, %v1110_v7  ;;  %v1314_v29 = vmul.f32 %v3023_v4, %v784_v50  ;;  %v1350_v43 = vmul.f32 %v3018_v60, %v3484_v1 }
 0x14a   : > { %v1418_v45 = vmul.f32 %v3025_v5, %v850_v6  ;;  %v1513_v22 = vmax.f32 %v1481_v17, 0.0  ;;  %v1074_v42 = vadd.f32 %v1042_v26, %v1006_v25  ;;  %v3934_v14 = vmax.f32 %v2671_v8, 0.0 }
 0x14b   : > { %v4863_v53 = vrot.slane %v3434_v0, 7  ;;  %v4864_v46 = vrot.slane %v3484_v1, 7  ;;  %v1246_v48 = vadd.f32 %v1214_v23, %v1178_v13  ;;  %v1382_v7 = vadd.f32 %v1350_v43, %v1314_v29  ;;  %v612_v43 = vpop.f32.mrf.mxu0  ;;  %v4865_v23 = vld [vmem:[#allocation15_spill] sm:$0xff] }
 0x14c   : > { %v868_v50 = vsel %vm840_vm4, %v831_v2, %v813_v10  ;;  %v939_v6 = vmul.f32 %v3011_v56, %v3738_v61  ;;  %2706 = vmatmul.mubr.msk.f32.gmra.mxu0 %vm1535_vm6, %v1513_v22  ;;  %v3953_v1 = vmul.f32 %v3004_v52, %v3934_v14  ;;  %v3957_v28 = vmul.f32 %v3008_v54, %v3934_v14 }
 0x14d   : > { %v3942_v39 = vsel %vm725_vm3, %v4864_v46, %v4863_v53  ;;  %v1278_v29 = vadd.f32 %v1246_v48, %v1074_v42  ;;  %v1450_v10 = vadd.f32 %v1418_v45, %v1382_v7  ;;  %v3961_v61 = vmul.f32 %v3018_v60, %v3934_v14 }
 0x14e   : > { %v3965_v2 = vsel %vm803_vm5, %v868_v50, 0.0  ;;  %v1007_v8 = vadd.f32 %v4865_v23, %v939_v6  ;;  %v1043_v17 = vmul.f32 %v3013_v57, %v3765_v62  ;;  %v1111_v25 = vmul.f32 %v3016_v59, %v3838_v20 }
 0x14f   : > { %v1215_v42 = vmul.f32 %v3021_v3, %v3865_v38  ;;  %v1482_v45 = vadd.f32 %v1450_v10, %v1278_v29  ;;  %v1315_v13 = vmul.f32 %v3023_v4, %v3942_v39  ;;  %v1419_v22 = vmul.f32 %v3025_v5, %v3965_v2 }
 0x150   : > { %v3978_v53 = vmax.f32 %v612_v43, 0.0  ;;  %v1075_v46 = vadd.f32 %v1043_v17, %v1007_v8  ;;  %v1179_v48 = vadd.f32 %v3365_v15, %v1111_v25  ;;  %v4866_v62 = vrot.slane %v3579_v34, 7 }
 0x151   : > { %v4867_v7 = vrot.slane %v3530_v63, 7  ;;  %v4868_v6 = vrot.slane %v3530_v63, 1  ;;  %v4869_v29 = vrot.slane %v3579_v34, 1  ;;  %v1514_v43 = vmax.f32 %v1482_v45, 0.0  ;;  %v2674_v45 = vpop.f32.mrf.mxu0 }
 0x152   : > { %v1383_v23 = vadd.f32 %v3464_v19, %v1315_v13  ;;  %v1247_v17 = vadd.f32 %v1215_v42, %v1179_v48  ;;  %v4000_v25 = vmul.f32 %v3004_v52, %v3978_v53  ;;  %v940_v42 = vmul.f32 %v3011_v56, %v3791_v9 }
 0x153   : > { %v754_v50 = vsel %vm725_vm3, %v4867_v7, %v4866_v62  ;;  %v3993_v10 = vsel %vm840_vm4, %v4869_v29, %v4868_v6  ;;  %v4004_v62 = vmul.f32 %v3008_v54, %v3978_v53  ;;  %v4008_v7 = vmul.f32 %v3018_v60, %v3978_v53  ;;  %2708 = vmatprep.mubr.msk.f32.mxu1 %vm1535_vm6, %v1514_v43 }
 0x154   : > { %v1451_v19 = vadd.f32 %v1419_v22, %v1383_v23  ;;  %v4013_v13 = vsel %vm687_vm2, %v754_v50, 0.0  ;;  %v1044_v48 = vmul.f32 %v3013_v57, %v3814_v24  ;;  %v1279_v6 = vadd.f32 %v1247_v17, %v1075_v46 }
 0x155   : > { %v1180_v29 = vadd.f32 %v3509_v37, %v1112_v35  ;;  %v1316_v8 = vmul.f32 %v3023_v4, %v4013_v13  ;;  %v1420_v43 = vmul.f32 %v3025_v5, %v3993_v10  ;;  %v1008_v22 = vadd.f32 %v3407_v44, %v940_v42 }
 0x156   : > { %v4025_v23 = vmax.f32 %v2674_v45, 0.0  ;;  %v4870_v50 = vrot.slane %v3530_v63, 7  ;;  %v4871_v9 = vrot.slane %v3579_v34, 7  ;;  %v4872_v37 = vrot.slane %v3579_v34, 1 }
 0x157   : > { %v4873_v35 = vrot.slane %v3530_v63, 1  ;;  %v1483_v17 = vadd.f32 %v1451_v19, %v1279_v6  ;;  %v1248_v0 = vadd.f32 %v1216_v58, %v1180_v29  ;;  %v1384_v44 = vadd.f32 %v3605_v27, %v1316_v8  ;;  %v622_v63 = vpop.f32.mrf.mxu0 }
 0x158   : > { %v4033_v24 = vsel %vm725_vm3, %v4871_v9, %v4870_v50  ;;  %v1076_v42 = vadd.f32 %v1044_v48, %v1008_v22  ;;  %v4050_v34 = vmul.f32 %v3004_v52, %v4025_v23  ;;  %v4054_v58 = vmul.f32 %v3008_v54, %v4025_v23 }
 0x159   : > { %v869_v46 = vsel %vm840_vm4, %v4873_v35, %v4872_v37  ;;  %v1515_v9 = vmax.f32 %v1483_v17, 0.0  ;;  %v1452_v37 = vadd.f32 %v1420_v43, %v1384_v44  ;;  %v4058_v27 = vmul.f32 %v3018_v60, %v4025_v23 }
 0x15a   : > { %v4044_v45 = vsel %vm803_vm5, %v869_v46, 0.0  ;;  %4874 = vst [vmem:[#allocation15_spill] sm:$0xff] %v4050_v34  ;;  %v1280_v8 = vadd.f32 %v1248_v0, %v1076_v42  ;;  %v941_v19 = vmul.f32 %v3011_v56, %v3838_v20  ;;  %v1045_v48 = vmul.f32 %v3013_v57, %v3865_v38  ;;  %v2816_v20 = vld [vmem:[%s4752_s4] sm:$0xf]  ;;  %v4898_v34 = vld [vmem:[#allocation4_spill] sm:$0xff] }
 0x15b   : > { %v1113_v6 = vmul.f32 %v3016_v59, %v3942_v39  ;;  %2709 = vmatmul.mubr.msk.f32.vlgmr.msra.gmra.mxu1 %vm1535_vm6, %v1515_v9  ;;  %v1217_v29 = vmul.f32 %v3021_v3, %v3965_v2  ;;  %v1317_v43 = vmul.f32 %v3023_v4, %v4033_v24  ;;  %v1421_v0 = vmul.f32 %v3025_v5, %v4044_v45 }
 0x15c   : > { %v4073_v22 = vmax.f32 %v622_v63, 0.0  ;;  %2736 = vmatpush3.msk.msra.mxu1 %vm402_vm0, %v2816_v20  ;;  %v1484_v38 = vadd.f32 %v1452_v37, %v1280_v8  ;;  %v1009_v35 = vadd.f32 %v3361_v32, %v941_v19  ;;  %v4875_v17 = vrot.slane %v3679_v33, 7 }
 0x15d   : > { %v1181_v46 = vadd.f32 %v3460_v40, %v1113_v6  ;;  %v4876_v44 = vrot.slane %v3630_v12, 7  ;;  %v1385_v63 = vadd.f32 %v3561_v31, %v1317_v43  ;;  %v2677_v6 = vpop.f32.mrf.mxu0 }
 0x15e   : > { %v4092_v37 = vmul.f32 %v3004_v52, %v4073_v22  ;;  %v1516_v32 = vmax.f32 %v1484_v38, 0.0  ;;  %v1077_v8 = vadd.f32 %v1045_v48, %v1009_v35  ;;  %v4096_v19 = vmul.f32 %v3008_v54, %v4073_v22 }
 0x15f   : > { %v755_v42 = vsel %vm725_vm3, %v4876_v44, %v4875_v17  ;;  %v1249_v40 = vadd.f32 %v1217_v29, %v1181_v46  ;;  %v1453_v20 = vadd.f32 %v1421_v0, %v1385_v63  ;;  %v4100_v31 = vmul.f32 %v3018_v60, %v4073_v22 }
 0x160   : > { %4877 = vst [vmem:[#allocation24_spill] sm:$0xff] %v4092_v37  ;;  %v4104_v43 = vsel %vm687_vm2, %v755_v42, 0.0  ;;  %v4878_v52 = vrot.slane %v3630_v12, 1  ;;  %v4879_v38 = vrot.slane %v3679_v33, 1  ;;  %2711 = vmatprep.mubr.msk.f32.mxu1 %vm1535_vm6, %v1516_v32  ;;  %v1010_v0 = vadd.f32 %v3505_v16, %v3911_v30 }
 0x161   : > { %v1281_v29 = vadd.f32 %v1249_v40, %v1077_v8  ;;  %v1114_v35 = vmul.f32 %v3016_v59, %v4013_v13  ;;  %v1218_v46 = vmul.f32 %v3021_v3, %v3993_v10  ;;  %v1318_v17 = vmul.f32 %v3023_v4, %v4104_v43 }
 0x162   : > { %v4112_v48 = vsel %vm840_vm4, %v4879_v38, %v4878_v52  ;;  %v4125_v42 = vmax.f32 %v2677_v6, 0.0  ;;  %v4880_v63 = vrot.slane %v3630_v12, 7  ;;  %v4881_v32 = vrot.slane %v3679_v33, 7  ;;  %v632_v33 = vpop.f32.mrf.mxu0 }
 0x163   : > { %v1422_v44 = vmul.f32 %v3025_v5, %v4112_v48  ;;  %v1485_v30 = vadd.f32 %v1453_v20, %v1281_v29  ;;  %v1078_v8 = vadd.f32 %v3927_v21, %v1010_v0  ;;  %v1182_v40 = vadd.f32 %v3601_v47, %v1114_v35 }
 0x164   : > { %v4133_v16 = vsel %vm725_vm3, %v4881_v32, %v4880_v63  ;;  %v4882_v52 = vmov %v4879_v38  ;;  %v4883_v38 = vrot.slane %v3630_v12, 1  ;;  %v1386_v50 = vadd.f32 %v3705_v11, %v1318_v17 }
 0x165   : > { %v723_v26 = vrot.slane %v4125_v42, 7  ;;  %v4148_v20 = vmul.f32 %v3008_v54, %v4125_v42  ;;  %v1517_v21 = vmax.f32 %v1485_v30, 0.0  ;;  %v1250_v29 = vadd.f32 %v1218_v46, %v1182_v40  ;;  %v4887_v30 = vld [vmem:[#allocation22_spill] sm:$0xff] }
 0x166   : > { %v870_v6 = vsel %vm840_vm4, %v4883_v38, %v4882_v52  ;;  %v4152_v47 = vmul.f32 %v3018_v60, %v4125_v42  ;;  %v1454_v11 = vadd.f32 %v1422_v44, %v1386_v50  ;;  %v943_v0 = vmul.f32 %v3011_v56, %v3942_v39  ;;  %v4886_v44 = vld [vmem:[#allocation20_spill] sm:$0xff] }
 0x167   : > { %4884 = vst [vmem:[#allocation25_spill] sm:$0xff] %v4148_v20  ;;  %v4156_v12 = vsel %vm803_vm5, %v870_v6, 0.0  ;;  %v1047_v35 = vmul.f32 %v3013_v57, %v3965_v2  ;;  %v1115_v17 = vmul.f32 %v3016_v59, %v4033_v24  ;;  %2712 = vmatmul.mubr.msk.f32.gmra.mxu1 %vm1535_vm6, %v1517_v21  ;;  %v1282_v46 = vadd.f32 %v1250_v29, %v1078_v8  ;;  %v4890_v21 = vld [vmem:[#allocation13_spill] sm:$0xff] }
 0x168   : > { %4885 = vst [vmem:[#allocation26_spill] sm:$0xff] %v4152_v47  ;;  %v1219_v63 = vmul.f32 %v3021_v3, %v4044_v45  ;;  %v1319_v32 = vmul.f32 %v3023_v4, %v4133_v16  ;;  %v1423_v50 = vmul.f32 %v3025_v5, %v4156_v12  ;;  %v1011_v39 = vadd.f32 %v4886_v44, %v943_v0 }
 0x169   : > { %v1183_v40 = vadd.f32 %v4887_v30, %v1115_v17  ;;  %v4173_v2 = vmax.f32 %v632_v33, 0.0  ;;  %v4888_v52 = vrot.slane %v3779_v18, 7  ;;  %v4889_v38 = vrot.slane %v3730_v55, 7 }
 0x16a   : > { %v1486_v6 = vadd.f32 %v1454_v11, %v1282_v46  ;;  %v1387_v29 = vadd.f32 %v4890_v21, %v1319_v32  ;;  %v4891_v0 = vrot.slane %v3730_v55, 1  ;;  %v4892_v17 = vrot.slane %v3779_v18, 1 }
 0x16b   : > { %v756_v8 = vsel %vm725_vm3, %v4889_v38, %v4888_v52  ;;  %v1079_v44 = vadd.f32 %v1047_v35, %v1011_v39  ;;  %v1251_v30 = vadd.f32 %v1219_v63, %v1183_v40  ;;  %v705_v9 = vrot.slane %v4173_v2, 7 }
 0x16c   : > { %v4184_v15 = vsel %vm687_vm2, %v756_v8, 0.0  ;;  %v4192_v33 = vsel %vm840_vm4, %v4892_v17, %v4891_v0  ;;  %v4756_v11 = vrot.slane %v4173_v2, 1  ;;  %v1518_v46 = vmax.f32 %v1486_v6, 0.0  ;;  %v2680_v17 = vpop.f32.mrf.mxu0 }
 0x16d   : > { %v1455_v32 = vadd.f32 %v1423_v50, %v1387_v29  ;;  %v1162_v52 = vmul.f32 %v3008_v54, %v4173_v2  ;;  %v1364_v38 = vmul.f32 %v3018_v60, %v4173_v2  ;;  %v1283_v8 = vadd.f32 %v1251_v30, %v1079_v44  ;;  %v4895_v44 = vld [vmem:[#allocation23_spill] sm:$0xff] }
 0x16e   : > { %v4202_v21 = vsel %vm725_vm3, %v705_v9, %v723_v26  ;;  %v760_v35 = vsel %vm725_vm3, %v723_v26, %v705_v9  ;;  %v4893_v63 = vrot.slane %v4125_v42, 1  ;;  %2714 = vmatprep.mubr.msk.f32.mxu1 %vm1535_vm6, %v1518_v46  ;;  %v944_v26 = vmul.f32 %v3011_v56, %v4013_v13 }
 0x16f   : > { %v798_v54 = vsel %vm687_vm2, %v760_v35, 0.0  ;;  %v4219_v39 = vmul.f32 %v3016_v59, %v4202_v21  ;;  %v1048_v9 = vmul.f32 %v3013_v57, %v3993_v10  ;;  %v1487_v40 = vadd.f32 %v1455_v32, %v1283_v8 }
 0x170   : > { %v4212_v50 = vsel %vm840_vm4, %v4893_v63, %v4756_v11  ;;  %v1126_v6 = vmul.f32 %v3016_v59, %v798_v54  ;;  %v1328_v29 = vmul.f32 %v3023_v4, %v798_v54  ;;  %v1116_v0 = vmul.f32 %v3016_v59, %v4104_v43  ;;  %v4897_v63 = vld [vmem:[#allocation14_spill] sm:$0xff] }
 0x171   : > { %4894 = vst [vmem:[#allocation20_spill] sm:$0xff] %v4219_v39  ;;  %v1012_v30 = vadd.f32 %v4895_v44, %v944_v26  ;;  %v1220_v46 = vmul.f32 %v3021_v3, %v4112_v48  ;;  %v1320_v13 = vmul.f32 %v3023_v4, %v4184_v15  ;;  %v1424_v10 = vmul.f32 %v3025_v5, %v4192_v33 }
 0x172   : > { %v1519_v32 = vmax.f32 %v1487_v40, 0.0  ;;  %v4236_v8 = vadd.f32 %v1162_v52, %v1126_v6  ;;  %v4238_v35 = vadd.f32 %v1364_v38, %v1328_v29  ;;  %v1184_v54 = vadd.f32 %v4897_v63, %v1116_v0  ;;  %v642_v29 = vpop.f32.mrf.mxu0 }
 0x173   : > { %v1080_v11 = vadd.f32 %v1048_v9, %v1012_v30  ;;  %v1388_v20 = vadd.f32 %v4898_v34, %v1320_v13  ;;  %v686_v26 = vmax.f32 %v2680_v17, 0.0  ;;  %v4899_v44 = vrot.slane %v3730_v55, 7 }
 0x174   : > { %4896 = vst [vmem:[#allocation22_spill] sm:$0xff] %v4236_v8  ;;  %v4900_v39 = vrot.slane %v3779_v18, 7  ;;  %2715 = vmatmul.mubr.msk.f32.gmra.mxu1 %vm1535_vm6, %v1519_v32  ;;  %v1252_v52 = vadd.f32 %v1220_v46, %v1184_v54  ;;  %v4901_v38 = vrot.slane %v3779_v18, 1  ;;  %v4902_v40 = vrot.slane %v3730_v55, 1  ;;  %v4904_v18 = vld [vmem:[#allocation21_spill] sm:$0xff]  ;;  %v4905_v54 = vld [vmem:[#allocation7_spill] sm:$0xff] }
 0x175   : > { %v945_v34 = vmul.f32 %v3011_v56, %v4033_v24  ;;  %v1049_v6 = vmul.f32 %v3013_v57, %v4044_v45  ;;  %v1456_v0 = vadd.f32 %v1424_v10, %v1388_v20  ;;  %v839_v17 = vrot.slane %v686_v26, 1 }
 0x176   : > { %v4248_v37 = vsel %vm725_vm3, %v4900_v39, %v4899_v44  ;;  %v871_v9 = vsel %vm840_vm4, %v4902_v40, %v4901_v38  ;;  %v724_v39 = vrot.slane %v686_v26, 7  ;;  %v4262_v30 = vmul.f32 %v3018_v60, %v686_v26  ;;  %v4908_v40 = vld [vmem:[#allocation6_spill] sm:$0xff] }
 0x177   : > { %v1284_v46 = vadd.f32 %v1252_v52, %v1080_v11  ;;  %v4266_v55 = vsel %vm803_vm5, %v871_v9, 0.0  ;;  %v1013_v13 = vadd.f32 %v4904_v18, %v945_v34  ;;  %v1117_v24 = vmul.f32 %v3016_v59, %v4133_v16 }
 0x178   : > { %4903 = vst [vmem:[#allocation13_spill] sm:$0xff] %v4262_v30  ;;  %v1221_v45 = vmul.f32 %v3021_v3, %v4156_v12  ;;  %v1321_v20 = vmul.f32 %v3023_v4, %v4248_v37  ;;  %v1425_v10 = vmul.f32 %v3025_v5, %v4266_v55  ;;  %v685_v32 = vmax.f32 %v642_v29, 0.0 }
 0x179   : > { %v1488_v11 = vadd.f32 %v1456_v0, %v1284_v46  ;;  %v1081_v63 = vadd.f32 %v1049_v6, %v1013_v13  ;;  %v1185_v26 = vadd.f32 %v4905_v54, %v1117_v24  ;;  %v4906_v44 = vrot.slane %v3879_v36, 7 }
 0x17a   : > { %v4907_v52 = vrot.slane %v3830_v51, 7  ;;  %v1389_v9 = vadd.f32 %v4908_v40, %v1321_v20  ;;  %v706_v34 = vrot.slane %v685_v32, 7  ;;  %v821_v18 = vrot.slane %v685_v32, 1 }
 0x17b   : > { %v1366_v30 = vmul.f32 %v3018_v60, %v685_v32  ;;  %v1520_v8 = vmax.f32 %v1488_v11, 0.0  ;;  %v1253_v47 = vadd.f32 %v1221_v45, %v1185_v26  ;;  %v4909_v29 = vrot.slane %v3830_v51, 1 }
 0x17c   : > { %v757_v38 = vsel %vm725_vm3, %v4907_v52, %v4906_v44  ;;  %v4910_v0 = vrot.slane %v3879_v36, 1  ;;  %v1457_v13 = vadd.f32 %v1425_v10, %v1389_v9  ;;  %v743_v24 = vsel %vm725_vm3, %v706_v34, %v724_v39 }
 0x17d   : > { %v4288_v6 = vsel %vm687_vm2, %v757_v38, 0.0  ;;  %v761_v60 = vsel %vm725_vm3, %v724_v39, %v706_v34  ;;  %v858_v45 = vsel %vm840_vm4, %v821_v18, %v839_v17  ;;  %2717 = vmatprep.mubr.msk.f32.mxu1 %vm1535_vm6, %v1520_v8  ;;  %v1285_v20 = vadd.f32 %v1253_v47, %v1081_v63  ;;  %v4911_v38 = vld [vmem:[#allocation2_spill] sm:$0xff] }
 0x17e   : > { %v4296_v46 = vsel %vm840_vm4, %v4910_v0, %v4909_v29  ;;  %v800_v32 = vsel %vm687_vm2, %v761_v60, 0.0  ;;  %v876_v11 = vsel %vm840_vm4, %v839_v17, %v821_v18  ;;  %v4310_v10 = vmul.f32 %v3023_v4, %v743_v24  ;;  %v4912_v18 = vld [vmem:[#allocation19_spill] sm:$0xff] }
 0x17f   : > { %v916_v54 = vsel %vm803_vm5, %v876_v11, 0.0  ;;  %v1330_v39 = vmul.f32 %v3023_v4, %v800_v32  ;;  %v1434_v26 = vmul.f32 %v3025_v5, %v858_v45  ;;  %v946_v8 = vmul.f32 %v3011_v56, %v4104_v43  ;;  %v4915_v45 = vld [vmem:[#allocation16_spill] sm:$0xff] }
 0x180   : > { %v1489_v47 = vadd.f32 %v1457_v13, %v1285_v20  ;;  %v4319_v63 = vmul.f32 %v3025_v5, %v916_v54  ;;  %v1050_v17 = vmul.f32 %v3013_v57, %v4112_v48  ;;  %v1118_v44 = vmul.f32 %v3016_v59, %v4184_v15 }
 0x181   : > { %v1398_v52 = vadd.f32 %v1366_v30, %v1330_v39  ;;  %v1014_v40 = vadd.f32 %v4911_v38, %v946_v8  ;;  %v1222_v9 = vmul.f32 %v3021_v3, %v4192_v33  ;;  %v1322_v34 = vmul.f32 %v3023_v4, %v4288_v6  ;;  %v4918_v38 = vld [vmem:[#allocation3_spill] sm:$0xff] }
 0x182   : > { %v1521_v43 = vmax.f32 %v1489_v47, 0.0  ;;  %v1186_v29 = vadd.f32 %v4912_v18, %v1118_v44  ;;  %v1426_v0 = vmul.f32 %v3025_v5, %v4296_v46  ;;  %v4913_v48 = vrot.slane %v3830_v51, 7 }
 0x183   : > { %v4914_v13 = vrot.slane %v3879_v36, 7  ;;  %v4341_v24 = vadd.f32 %v1434_v26, %v1398_v52  ;;  %v1082_v60 = vadd.f32 %v1050_v17, %v1014_v40  ;;  %v1390_v20 = vadd.f32 %v4915_v45, %v1322_v34 }
 0x184   : > { %v4916_v32 = vrot.slane %v3879_v36, 1  ;;  %v4917_v11 = vrot.slane %v3830_v51, 1  ;;  %2718 = vmatmul.mubr.msk.f32.gmra.mxu1 %vm1535_vm6, %v1521_v43  ;;  %v1254_v39 = vadd.f32 %v1222_v9, %v1186_v29  ;;  %v947_v26 = vmul.f32 %v3011_v56, %v4133_v16  ;;  %v4921_v43 = vld [vmem:[#allocation10_spill] sm:$0xff]  ;;  %v4922_v29 = vld [vmem:[#allocation11_spill] sm:$0xff] }
 0x185   : > { %v4339_v30 = vsel %vm725_vm3, %v4914_v13, %v4913_v48  ;;  %v1051_v47 = vmul.f32 %v3013_v57, %v4156_v12  ;;  %v1458_v17 = vadd.f32 %v1426_v0, %v1390_v20  ;;  %v1119_v51 = vmul.f32 %v3016_v59, %v4248_v37 }
 0x186   : > { %v872_v54 = vsel %vm840_vm4, %v4917_v11, %v4916_v32  ;;  %v1223_v36 = vmul.f32 %v3021_v3, %v4266_v55  ;;  %v1323_v44 = vmul.f32 %v3023_v4, %v4339_v30  ;;  %v1286_v52 = vadd.f32 %v1254_v39, %v1082_v60 }
 0x187   : > { %v4353_v8 = vsel %vm803_vm5, %v872_v54, 0.0  ;;  %v1015_v40 = vadd.f32 %v4918_v38, %v947_v26  ;;  %v4919_v16 = vrot.slane %v3978_v53, 7  ;;  %v4920_v12 = vrot.slane %v3934_v14, 7 }
 0x188   : > { %v1427_v9 = vmul.f32 %v3025_v5, %v4353_v8  ;;  %v1187_v18 = vadd.f32 %v4921_v43, %v1119_v51  ;;  %v1391_v0 = vadd.f32 %v4922_v29, %v1323_v44  ;;  %v4923_v13 = vrot.slane %v3934_v14, 1 }
 0x189   : > { %v758_v34 = vsel %vm725_vm3, %v4920_v12, %v4919_v16  ;;  %v4924_v60 = vrot.slane %v3978_v53, 1  ;;  %v1490_v20 = vadd.f32 %v1458_v17, %v1286_v52  ;;  %v1083_v32 = vadd.f32 %v1051_v47, %v1015_v40  ;;  %v4925_v16 = vld [vmem:[#allocation12_spill] sm:$0xff] }
 0x18a   : > { %v4378_v48 = vsel %vm687_vm2, %v758_v34, 0.0  ;;  %v948_v11 = vmul.f32 %v3011_v56, %v4184_v15  ;;  %v1052_v54 = vmul.f32 %v3013_v57, %v4192_v33  ;;  %v1255_v39 = vadd.f32 %v1223_v36, %v1187_v18  ;;  %v4926_v52 = vld [vmem:[#allocation8_spill] sm:$0xff] }
 0x18b   : > { %v4386_v45 = vsel %vm840_vm4, %v4924_v60, %v4923_v13  ;;  %v1459_v26 = vadd.f32 %v1427_v9, %v1391_v0  ;;  %v1120_v51 = vmul.f32 %v3016_v59, %v4288_v6  ;;  %v1224_v44 = vmul.f32 %v3021_v3, %v4296_v46 }
 0x18c   : > { %v1522_v38 = vmax.f32 %v1490_v20, 0.0  ;;  %v1016_v12 = vadd.f32 %v4925_v16, %v948_v11  ;;  %v1324_v47 = vmul.f32 %v3023_v4, %v4378_v48  ;;  %v1428_v15 = vmul.f32 %v3025_v5, %v4386_v45 }
 0x18d   : > { %v1287_v17 = vadd.f32 %v1255_v39, %v1083_v32  ;;  %v1188_v33 = vadd.f32 %v4926_v52, %v1120_v51  ;;  %v4927_v36 = vrot.slane %v3934_v14, 7  ;;  %v4928_v40 = vrot.slane %v3978_v53, 7  ;;  %v4931_v39 = vld [vmem:[#allocation5_spill] sm:$0xff] }
 0x18e   : > { %v4929_v34 = vmov %v4924_v60  ;;  %v4930_v43 = vmov %v4923_v13  ;;  %2720 = vmatprep.mubr.msk.f32.mxu1 %vm1535_vm6, %v1522_v38  ;;  %v1084_v29 = vadd.f32 %v1052_v54, %v1016_v12  ;;  %v1392_v0 = vadd.f32 %v4008_v7, %v1324_v47 }
 0x18f   : > { %v4408_v9 = vsel %vm725_vm3, %v4928_v40, %v4927_v36  ;;  %v873_v18 = vsel %vm840_vm4, %v4930_v43, %v4929_v34  ;;  %v949_v60 = vmul.f32 %v3011_v56, %v4248_v37  ;;  %v1491_v20 = vadd.f32 %v1459_v26, %v1287_v17  ;;  %v4932_v37 = vld [vmem:[#allocation17_spill] sm:$0xff] }
 0x190   : > { %v4420_v13 = vsel %vm803_vm5, %v873_v18, 0.0  ;;  %v1256_v32 = vadd.f32 %v1224_v44, %v1188_v33  ;;  %v1053_v14 = vmul.f32 %v3013_v57, %v4266_v55  ;;  %v1121_v53 = vmul.f32 %v3016_v59, %v4339_v30 }
 0x191   : > { %v1460_v11 = vadd.f32 %v1428_v15, %v1392_v0  ;;  %v1017_v54 = vadd.f32 %v4931_v39, %v949_v60  ;;  %v1225_v7 = vmul.f32 %v3021_v3, %v4353_v8  ;;  %v1325_v51 = vmul.f32 %v3023_v4, %v4408_v9 }
 0x192   : > { %v1523_v38 = vmax.f32 %v1491_v20, 0.0  ;;  %v1288_v16 = vadd.f32 %v1256_v32, %v1084_v29  ;;  %v1189_v26 = vadd.f32 %v4932_v37, %v1121_v53  ;;  %v1429_v44 = vmul.f32 %v3025_v5, %v4420_v13 }
 0x193   : > { %v1085_v55 = vadd.f32 %v1053_v14, %v1017_v54  ;;  %v1393_v12 = vadd.f32 %v3961_v61, %v1325_v51  ;;  %v4933_v47 = vrot.slane %v4073_v22, 7  ;;  %v4934_v15 = vrot.slane %v4025_v23, 7  ;;  %v4937_v14 = vld [vmem:[#allocation18_spill] sm:$0xff] }
 0x194   : > { %v4935_v52 = vrot.slane %v4025_v23, 1  ;;  %v4936_v33 = vrot.slane %v4073_v22, 1  ;;  %2721 = vmatmul.mubr.msk.f32.gmra.mxu1 %vm1535_vm6, %v1523_v38  ;;  %v1492_v40 = vadd.f32 %v1460_v11, %v1288_v16  ;;  %v1257_v34 = vadd.f32 %v1225_v7, %v1189_v26 }
 0x195   : > { %v759_v17 = vsel %vm725_vm3, %v4934_v15, %v4933_v47  ;;  %v950_v43 = vmul.f32 %v3011_v56, %v4288_v6  ;;  %v1461_v18 = vadd.f32 %v1429_v44, %v1393_v12  ;;  %v1054_v29 = vmul.f32 %v3013_v57, %v4296_v46 }
 0x196   : > { %v4449_v36 = vsel %vm840_vm4, %v4936_v33, %v4935_v52  ;;  %v796_v61 = vsel %vm687_vm2, %v759_v17, 0.0  ;;  %v1122_v0 = vmul.f32 %v3016_v59, %v4378_v48  ;;  %v1226_v60 = vmul.f32 %v3021_v3, %v4386_v45 }
 0x197   : > { %v1524_v20 = vmax.f32 %v1492_v40, 0.0  ;;  %v1289_v32 = vadd.f32 %v1257_v34, %v1085_v55  ;;  %v1018_v53 = vadd.f32 %v4937_v14, %v950_v43  ;;  %v1326_v11 = vmul.f32 %v3023_v4, %v796_v61 }
 0x198   : > { %v1190_v39 = vadd.f32 %v4004_v62, %v1122_v0  ;;  %v1430_v6 = vmul.f32 %v3025_v5, %v4449_v36  ;;  %v4938_v54 = vmov %v4934_v15  ;;  %v4939_v46 = vmov %v4933_v47 }
 0x199   : > { %v741_v7 = vsel %vm725_vm3, %v4939_v46, %v4938_v54  ;;  %v4940_v51 = vmov %v4936_v33  ;;  %v4941_v38 = vmov %v4935_v52  ;;  %2723 = vmatprep.mubr.msk.f32.mxu1 %vm1535_vm6, %v1524_v20  ;;  %v1493_v62 = vadd.f32 %v1461_v18, %v1289_v32  ;;  %v4942_v33 = vld [vmem:[#allocation9_spill] sm:$0xff] }
 0x19a   : > { %v874_v16 = vsel %vm840_vm4, %v4941_v38, %v4940_v51  ;;  %v1086_v37 = vadd.f32 %v1054_v29, %v1018_v53  ;;  %v1394_v26 = vadd.f32 %v4100_v31, %v1326_v11  ;;  %v1258_v55 = vadd.f32 %v1226_v60, %v1190_v39 }
 0x19b   : > { %v912_v44 = vsel %vm803_vm5, %v874_v16, 0.0  ;;  %v951_v12 = vmul.f32 %v3011_v56, %v4339_v30  ;;  %v1055_v22 = vmul.f32 %v3013_v57, %v4353_v8  ;;  %v1123_v23 = vmul.f32 %v3016_v59, %v4408_v9 }
 0x19c   : > { %v1525_v47 = vmax.f32 %v1493_v62, 0.0  ;;  %v1462_v15 = vadd.f32 %v1430_v6, %v1394_v26  ;;  %v1227_v17 = vmul.f32 %v3021_v3, %v4420_v13  ;;  %v1327_v31 = vmul.f32 %v3023_v4, %v741_v7 }
 0x19d   : > { %v1290_v52 = vadd.f32 %v1258_v55, %v1086_v37  ;;  %v1019_v40 = vadd.f32 %v4942_v33, %v951_v12  ;;  %v1191_v34 = vadd.f32 %v3957_v28, %v1123_v23  ;;  %v1431_v30 = vmul.f32 %v3025_v5, %v912_v44  ;;  %v4946_v12 = vld [vmem:[#allocation24_spill] sm:$0xff] }
 0x19e   : > { %2724 = vmatmul.mubr.msk.f32.gmra.mxu1 %vm1535_vm6, %v1525_v47  ;;  %v1395_v8 = vadd.f32 %v4058_v27, %v1327_v31  ;;  %v4943_v43 = vrot.slane %v4125_v42, 1  ;;  %v4944_v18 = vrot.slane %v4173_v2, 1  ;;  %v952_v0 = vmul.f32 %v3011_v56, %v4378_v48  ;;  %v4947_v47 = vld [vmem:[#allocation22_spill] sm:$0xff] }
 0x19f   : > { %v1056_v60 = vmul.f32 %v3013_v57, %v4386_v45  ;;  %v1494_v28 = vadd.f32 %v1462_v15, %v1290_v52  ;;  %v1087_v20 = vadd.f32 %v1055_v22, %v1019_v40  ;;  %v1259_v32 = vadd.f32 %v1227_v17, %v1191_v34  ;;  %v4949_v17 = vld [vmem:[#allocation25_spill] sm:$0xff]  ;;  %v4950_v40 = vld [vmem:[#allocation15_spill] sm:$0xff] }
 0x1a0   : > { %v857_v29 = vsel %vm840_vm4, %v4944_v18, %v4943_v43  ;;  %v1124_v14 = vmul.f32 %v3016_v59, %v796_v61  ;;  %v1463_v53 = vadd.f32 %v1431_v30, %v1395_v8  ;;  %v1020_v27 = vadd.f32 %v4000_v25, %v952_v0  ;;  %v4951_v43 = vld [vmem:[#allocation13_spill] sm:$0xff] }
 0x1a1   : > { %v1228_v42 = vmul.f32 %v3021_v3, %v4449_v36  ;;  %v1432_v41 = vmul.f32 %v3025_v5, %v857_v29  ;;  %v1526_v2 = vmax.f32 %v1494_v28, 0.0  ;;  %v1291_v11 = vadd.f32 %v1259_v32, %v1087_v20  ;;  %v2452_v20 = vld [vmem:[%s2900_s27 + $0x10] sm:$0xff]  ;;  %v2455_v32 = vld [vmem:[%s2900_s27 + $0x28] sm:$0xff] }
 0x1a2   : > { %v1192_v48 = vadd.f32 %v4096_v19, %v1124_v14  ;;  %v914_v45 = vsel %vm803_vm5, %v4212_v50, 0.0  ;;  %v1088_v39 = vadd.f32 %v1056_v60, %v1020_v27  ;;  %v953_v54 = vmul.f32 %v3011_v56, %v4408_v9  ;;  %v2456_v14 = vld [vmem:[%s2900_s27 + $0x30] sm:$0xff]  ;;  %v2458_v27 = vld [vmem:[%s2900_s27 + $0x40] sm:$0xff] }
 0x1a3   : > { %v1464_v6 = vadd.f32 %v1432_v41, %v4238_v35  ;;  %v1057_v25 = vmul.f32 %v3013_v57, %v4420_v13  ;;  %2726 = vmatprep.mubr.msk.f32.mxu1 %vm1535_vm6, %v1526_v2  ;;  %v1495_v46 = vadd.f32 %v1463_v53, %v1291_v11  ;;  %v1125_v38 = vmul.f32 %v3016_v59, %v741_v7  ;;  %v4945_v59 = vld [vmem:[#allocation26_spill] sm:$0xff]  ;;  %v2457_v53 = vld [vmem:[%s2900_s27 + $0x38] sm:$0xff]  ;;  %v2460_v41 = vld [vmem:[%s2900_s27 + $0x50] sm:$0xff] }
 0x1a4   : > { %v1260_v51 = vadd.f32 %v1228_v42, %v1192_v48  ;;  %v1229_v19 = vmul.f32 %v3021_v3, %v912_v44  ;;  %v1021_v49 = vadd.f32 %v3953_v1, %v953_v54  ;;  %v1329_v50 = vmul.f32 %v3023_v4, %v4202_v21  ;;  %v2459_v42 = vld [vmem:[%s2900_s27 + $0x48] sm:$0xff]  ;;  %v2461_v2 = vld [vmem:[%s2900_s27 + $0x58] sm:$0xff]  ;;  %v2462_v11 = vld [vmem:[%s2900_s27 + $0x60] sm:$0xff] }
 0x1a5   : > { %v1433_v35 = vmul.f32 %v3025_v5, %v914_v45  ;;  %v954_v9 = vmul.f32 %v3011_v56, %v796_v61  ;;  %v1527_v16 = vmax.f32 %v1495_v46, 0.0  ;;  %v1193_v13 = vadd.f32 %v4054_v58, %v1125_v38  ;;  %v2463_v48 = vld [vmem:[%s2900_s27 + $0x68] sm:$0xff]  ;;  %v2469_v46 = vld [vmem:[%s2900_s27 + $0x98] sm:$0xff] }
 0x1a6   : > { %v1292_v62 = vadd.f32 %v1260_v51, %v1088_v39  ;;  %v1058_v37 = vmul.f32 %v3013_v57, %v4449_v36  ;;  %v1089_v26 = vadd.f32 %v1057_v25, %v1021_v49  ;;  %v1397_v55 = vadd.f32 %v4945_v59, %v1329_v50  ;;  %v4948_v36 = vld [vmem:[#allocation20_spill] sm:$0xff]  ;;  %v2465_v39 = vld [vmem:[%s2900_s27 + $0x78] sm:$0xff]  ;;  %v2467_v54 = vld [vmem:[%s2900_s27 + $0x88] sm:$0xff] }
 0x1a7   : > { %v1022_v22 = vadd.f32 %v4946_v12, %v954_v9  ;;  %v1230_v1 = vmul.f32 %v3021_v3, %v857_v29  ;;  %2727 = vmatmul.mubr.msk.f32.gmra.mxu1 %vm1535_vm6, %v1527_v16  ;;  %v1261_v5 = vadd.f32 %v1229_v19, %v1193_v13  ;;  %v955_v21 = vmul.f32 %v3011_v56, %v741_v7  ;;  %v2468_v25 = vld [vmem:[%s2900_s27 + $0x90] sm:$0xff]  ;;  %v2470_v51 = vld [vmem:[%s2900_s27 + $0xa0] sm:$0xff]  ;;  %v2471_v38 = vld [vmem:[%s2900_s27 + $0xa8] sm:$0xff] }
 0x1a8   : > { %v1496_v4 = vadd.f32 %v1464_v6, %v1292_v62  ;;  %v1059_v61 = vmul.f32 %v3013_v57, %v912_v44  ;;  %v1465_v23 = vadd.f32 %v1433_v35, %v1397_v55  ;;  %v1195_v31 = vadd.f32 %v4949_v17, %v4948_v36  ;;  %v2466_v6 = vld [vmem:[%s2900_s27 + $0x80] sm:$0xff]  ;;  %v2472_v19 = vld [vmem:[%s2900_s27 + $0xb0] sm:$0xff]  ;;  %v2473_v49 = vld [vmem:[%s2900_s27 + $0xb8] sm:$0xff] }
 0x1a9   : > { %v1090_v58 = vadd.f32 %v1058_v37, %v1022_v22  ;;  %v1262_v15 = vadd.f32 %v1230_v1, %v4947_v47  ;;  %v1293_v33 = vadd.f32 %v1261_v5, %v1089_v26  ;;  %v1023_v34 = vadd.f32 %v4950_v40, %v955_v21  ;;  %v2474_v50 = vld [vmem:[%s2900_s27 + $0xc0] sm:$0xff]  ;;  %v2475_v35 = vld [vmem:[%s2900_s27 + $0xc8] sm:$0xff]  ;;  %v2476_v9 = vld [vmem:[%s2900_s27 + $0xd0] sm:$0xff] }
 0x1aa   : > { %v1528_v52 = vmax.f32 %v1496_v4, 0.0  ;;  %v1231_v30 = vmul.f32 %v3021_v3, %v914_v45  ;;  %v1399_v56 = vadd.f32 %v4951_v43, %v4310_v10  ;;  %v2464_v45 = vld [vmem:[%s2900_s27 + $0x70] sm:$0xff]  ;;  %v2477_v16 = vld [vmem:[%s2900_s27 + $0xd8] sm:$0xff]  ;;  %v2478_v62 = vld [vmem:[%s2900_s27 + $0xe0] sm:$0xff] }
 0x1ab   : > { %v1294_v8 = vadd.f32 %v1262_v15, %v1090_v58  ;;  %v1497_v57 = vadd.f32 %v1465_v23, %v1293_v33  ;;  %v1091_v7 = vadd.f32 %v1059_v61, %v1023_v34  ;;  %v2479_v13 = vld [vmem:[%s2900_s27 + $0xe8] sm:$0xff]  ;;  %v2480_v37 = vld [vmem:[%s2900_s27 + $0xf0] sm:$0xff]  ;;  %v2481_v26 = vld [vmem:[%s2900_s27 + $0xf8] sm:$0xff] }
 0x1ac   : > { %2729 = vmatprep.mubr.msk.f32.mxu1 %vm1535_vm6, %v1528_v52  ;;  %v1263_v44 = vadd.f32 %v1231_v30, %v1195_v31  ;;  %v1467_v29 = vadd.f32 %v4319_v63, %v1399_v56  ;;  %v2453_v63 = vld [vmem:[%s2900_s27 + $0x18] sm:$0xff]  ;;  %v2482_v59 = vld [vmem:[%s2900_s27 + $0x100] sm:$0xff]  ;;  %v2483_v55 = vld [vmem:[%s2900_s27 + $0x108] sm:$0xff] }
 0x1ad   : > { %v1498_v18 = vadd.f32 %v4341_v24, %v1294_v8  ;;  %v1529_v0 = vmax.f32 %v1497_v57, 0.0  ;;  %v2454_v24 = vld [vmem:[%s2900_s27 + $0x20] sm:$0xff] }
 0x1ae   : > { %v1295_v3 = vadd.f32 %v1263_v44, %v1091_v7 }
 0x1af   : > { %v1530_v60 = vmax.f32 %v1498_v18, 0.0  ;;  %2730 = vmatmul.mubr.msk.f32.gmra.mxu1 %vm1535_vm6, %v1529_v0 }
 0x1b0   : > { %v1499_v10 = vadd.f32 %v1467_v29, %v1295_v3 }
 0x1b1   : > { %2732 = vmatprep.mubr.msk.f32.mxu1 %vm1535_vm6, %v1530_v60 }
 0x1b2   : > { %v1531_v28 = vmax.f32 %v1499_v10, 0.0 }
 0x1b4   : > { %2733 = vmatmul.mubr.msk.f32.gmra.mxu1 %vm1535_vm6, %v1531_v28 }
 0x1b5   : > { %2737 = vmatprep.mubr.msk.f32.mxu1 %vm293_vm1, %v2452_v20 }
 0x1b8   : > { %2738 = vmatmul.mubr.msk.f32.vlgmr.msra.gmra.mxu1 %vm293_vm1, %v2453_v63 }
 0x1b9   : > { %2740 = vmatprep.mubr.msk.f32.mxu1 %vm293_vm1, %v2454_v24 }
 0x1bc   : > { %2741 = vmatmul.mubr.msk.f32.gmra.mxu1 %vm293_vm1, %v2455_v32 }
 0x1bd   : > { %2743 = vmatprep.mubr.msk.f32.mxu1 %vm293_vm1, %v2456_v14 }
 0x1c0   : > { %2744 = vmatmul.mubr.msk.f32.gmra.mxu1 %vm293_vm1, %v2457_v53  ;;  %v2689_v15 = vpop.f32.mrf.mxu0 }
 0x1c1   : > { %2746 = vmatprep.mubr.msk.f32.mxu1 %vm293_vm1, %v2458_v27 }
 0x1c2   : > { %v1698_v17 = vpop.f32.mrf.mxu0 }
 0x1c4   : > { %2747 = vmatmul.mubr.msk.f32.gmra.mxu1 %vm293_vm1, %v2459_v42 }
 0x1c5   : > { %2749 = vmatprep.mubr.msk.f32.mxu1 %vm293_vm1, %v2460_v41 }
 0x1c8   : > { %2750 = vmatmul.mubr.msk.f32.gmra.mxu1 %vm293_vm1, %v2461_v2 }
 0x1c9   : > { %2752 = vmatprep.mubr.msk.f32.mxu1 %vm293_vm1, %v2462_v11 }
 0x1cc   : > { %2753 = vmatmul.mubr.msk.f32.gmra.mxu1 %vm293_vm1, %v2463_v48 }
 0x1cd   : > { %2755 = vmatprep.mubr.msk.f32.mxu1 %vm293_vm1, %v2464_v45  ;;  %v2692_v52 = vpop.f32.mrf.mxu0 }
 0x1cf   : > { %v1708_v40 = vpop.f32.mrf.mxu0 }
 0x1d0   : > { %2756 = vmatmul.mubr.msk.f32.gmra.mxu1 %vm293_vm1, %v2465_v39 }
 0x1d1   : > { %2758 = vmatprep.mubr.msk.f32.mxu1 %vm293_vm1, %v2466_v6 }
 0x1d4   : > { %2759 = vmatmul.mubr.msk.f32.gmra.mxu1 %vm293_vm1, %v2467_v54 }
 0x1d5   : > { %2761 = vmatprep.mubr.msk.f32.mxu1 %vm293_vm1, %v2468_v25 }
 0x1d8   : > { %2762 = vmatmul.mubr.msk.f32.gmra.mxu1 %vm293_vm1, %v2469_v46 }
 0x1d9   : > { %2764 = vmatprep.mubr.msk.f32.mxu1 %vm293_vm1, %v2470_v51  ;;  %v2695_v30 = vpop.f32.mrf.mxu0 }
 0x1db   : > { %v1718_v43 = vpop.f32.mrf.mxu0 }
 0x1dc   : > { %2765 = vmatmul.mubr.msk.f32.gmra.mxu1 %vm293_vm1, %v2471_v38 }
 0x1dd   : > { %2767 = vmatprep.mubr.msk.f32.mxu1 %vm293_vm1, %v2472_v19 }
 0x1e0   : > { %2768 = vmatmul.mubr.msk.f32.gmra.mxu1 %vm293_vm1, %v2473_v49 }
 0x1e1   : > { %2770 = vmatprep.mubr.msk.f32.mxu1 %vm293_vm1, %v2474_v50 }
 0x1e4   : > { %2771 = vmatmul.mubr.msk.f32.gmra.mxu1 %vm293_vm1, %v2475_v35 }
 0x1e5   : > { %2773 = vmatprep.mubr.msk.f32.mxu1 %vm293_vm1, %v2476_v9 }
 0x1e6   : > { %v2698_v7 = vpop.f32.mrf.mxu0 }
 0x1e8   : > { %2774 = vmatmul.mubr.msk.f32.gmra.mxu1 %vm293_vm1, %v2477_v16  ;;  %v1728_v0 = vpop.f32.mrf.mxu0 }
 0x1e9   : > { %2776 = vmatprep.mubr.msk.f32.mxu1 %vm293_vm1, %v2478_v62 }
 0x1ec   : > { %2777 = vmatmul.mubr.msk.f32.gmra.mxu1 %vm293_vm1, %v2479_v13 }
 0x1ed   : > { %2779 = vmatprep.mubr.msk.f32.mxu1 %vm293_vm1, %v2480_v37 }
 0x1f0   : > { %2780 = vmatmul.mubr.msk.f32.gmra.mxu1 %vm293_vm1, %v2481_v26 }
 0x1f1   : > { %2782 = vmatprep.mubr.msk.f32.mxu1 %vm293_vm1, %v2482_v59 }
 0x1f3   : > { %v2701_v20 = vpop.f32.mrf.mxu0 }
 0x1f4   : > { %2783 = vmatmul.mubr.msk.f32.gmra.mxu1 %vm293_vm1, %v2483_v55 }
 0x1f5   : > { %v1738_v53 = vpop.f32.mrf.mxu0 }
 0x200   : > { %v2704_v11 = vpop.f32.mrf.mxu0 }
 0x202   : > { %v1748_v54 = vpop.f32.mrf.mxu0 }
 0x20c   : > { %v2707_v19 = vpop.f32.mrf.mxu0 }
 0x20e   : > { %v1758_v16 = vpop.f32.mrf.mxu0 }
 0x21b   : > { %v4615_v12 = vpop.f32.mrf.mxu1 }
 0x21d   : > { %v4617_v22 = vpop.f32.mrf.mxu1 }
 0x227   : > { %v4619_v1 = vpop.f32.mrf.mxu1 }
 0x229   : > { %v4621_v4 = vpop.f32.mrf.mxu1 }
 0x234   : > { %v4623_v5 = vpop.f32.mrf.mxu1 }
 0x236   : > { %v4625_v21 = vpop.f32.mrf.mxu1 }
 0x244   : > { %v4627_v61 = vpop.f32.mrf.mxu1 }
 0x246   : > { %v4629_v23 = vpop.f32.mrf.mxu1 }
 0x254   : > { %v4631_v58 = vpop.f32.mrf.mxu1 }
 0x256   : > { %v4633_v47 = vpop.f32.mrf.mxu1 }
 0x25e   : > { %v4635_v36 = vpop.f32.mrf.mxu1 }
 0x260   : > { %v4637_v31 = vpop.f32.mrf.mxu1 }
 0x267   : > { %v4639_v33 = vpop.f32.mrf.mxu1 }
 0x269   : > { %v4641_v34 = vpop.f32.mrf.mxu1 }
 0x26f   : > { %v4643_v8 = vpop.f32.mrf.mxu1 }
 0x271   : > { %v4645_v56 = vpop.f32.mrf.mxu1 }
 0x274   : > { %v4647_v57 = vpop.f32.mrf.mxu1 }
 0x276   : > { %v4650_v44 = vpop.f32.mrf.mxu1 }
 0x278   : > { %v2739_v18 = vpop.f32.mrf.mxu1 }
 0x279   : > { %v2218_v29 = vadd.f32 %v2739_v18, %v2689_v15 }
 0x27a   : > { %v2058_v3 = vpop.f32.mrf.mxu1 }
 0x27b   : > { %2251 = vst.msk [vmem:[%s4655_s26 + $0x8] sm:$0xff] %vm2249_vm7, %v2218_v29  ;;  %v2217_v60 = vadd.f32 %v2058_v3, %v1698_v17 }
 0x27c   : > { %v2742_v10 = vpop.f32.mrf.mxu1 }
 0x27d   : > { %2250 = vst.msk [vmem:[%s4655_s26] sm:$0xff] %vm2249_vm7, %v2217_v60  ;;  %v2220_v28 = vadd.f32 %v2742_v10, %v2692_v52 }
 0x27e   : > { %v2068_v63 = vpop.f32.mrf.mxu1 }
 0x27f   : > { %2253 = vst.msk [vmem:[%s4655_s26 + $0x18] sm:$0xff] %vm2249_vm7, %v2220_v28  ;;  %v2219_v24 = vadd.f32 %v2068_v63, %v1708_v40 }
 0x280   : > { %v2745_v32 = vpop.f32.mrf.mxu1 }
 0x281   : > { %2252 = vst.msk [vmem:[%s4655_s26 + $0x10] sm:$0xff] %vm2249_vm7, %v2219_v24  ;;  %v2222_v14 = vadd.f32 %v2745_v32, %v2695_v30 }
 0x282   : > { %v2078_v27 = vpop.f32.mrf.mxu1 }
 0x283   : > { %2255 = vst.msk [vmem:[%s4655_s26 + $0x28] sm:$0xff] %vm2249_vm7, %v2222_v14  ;;  %v2221_v42 = vadd.f32 %v2078_v27, %v1718_v43 }
 0x284   : > { %v2748_v41 = vpop.f32.mrf.mxu1 }
 0x285   : > { %2254 = vst.msk [vmem:[%s4655_s26 + $0x20] sm:$0xff] %vm2249_vm7, %v2221_v42  ;;  %v2224_v2 = vadd.f32 %v2748_v41, %v2698_v7 }
 0x286   : > { %v2088_v48 = vpop.f32.mrf.mxu1 }
 0x287   : > { %2257 = vst.msk [vmem:[%s4655_s26 + $0x38] sm:$0xff] %vm2249_vm7, %v2224_v2  ;;  %v2223_v45 = vadd.f32 %v2088_v48, %v1728_v0 }
 0x288   : > { %v2751_v39 = vpop.f32.mrf.mxu1 }
 0x289   : > { %2256 = vst.msk [vmem:[%s4655_s26 + $0x30] sm:$0xff] %vm2249_vm7, %v2223_v45  ;;  %v2226_v6 = vadd.f32 %v2751_v39, %v2701_v20 }
 0x28a   : > { %v2098_v25 = vpop.f32.mrf.mxu1 }
 0x28b   : > { %2259 = vst.msk [vmem:[%s4655_s26 + $0x48] sm:$0xff] %vm2249_vm7, %v2226_v6  ;;  %v2225_v46 = vadd.f32 %v2098_v25, %v1738_v53 }
 0x28c   : > { %v2754_v51 = vpop.f32.mrf.mxu1 }
 0x28d   : > { %2258 = vst.msk [vmem:[%s4655_s26 + $0x40] sm:$0xff] %vm2249_vm7, %v2225_v46  ;;  %v2228_v38 = vadd.f32 %v2754_v51, %v2704_v11 }
 0x28e   : > { %v2108_v49 = vpop.f32.mrf.mxu1 }
 0x28f   : > { %2261 = vst.msk [vmem:[%s4655_s26 + $0x58] sm:$0xff] %vm2249_vm7, %v2228_v38  ;;  %v2227_v50 = vadd.f32 %v2108_v49, %v1748_v54 }
 0x290   : > { %v2757_v35 = vpop.f32.mrf.mxu1 }
 0x291   : > { %2260 = vst.msk [vmem:[%s4655_s26 + $0x50] sm:$0xff] %vm2249_vm7, %v2227_v50  ;;  %v2230_v9 = vadd.f32 %v2757_v35, %v2707_v19 }
 0x292   : > { %v2118_v62 = vpop.f32.mrf.mxu1 }
 0x293   : > { %2263 = vst.msk [vmem:[%s4655_s26 + $0x68] sm:$0xff] %vm2249_vm7, %v2230_v9  ;;  %v2229_v13 = vadd.f32 %v2118_v62, %v1758_v16 }
 0x294   : > { %v2760_v37 = vpop.f32.mrf.mxu1 }
 0x295   : > { %2262 = vst.msk [vmem:[%s4655_s26 + $0x60] sm:$0xff] %vm2249_vm7, %v2229_v13  ;;  %v2232_v26 = vadd.f32 %v2760_v37, %v4615_v12 }
 0x296   : > { %v2128_v59 = vpop.f32.mrf.mxu1 }
 0x297   : > { %2265 = vst.msk [vmem:[%s4655_s26 + $0x78] sm:$0xff] %vm2249_vm7, %v2232_v26  ;;  %v2231_v55 = vadd.f32 %v2128_v59, %v4617_v22 }
 0x298   : > { %v2763_v15 = vpop.f32.mrf.mxu1 }
 0x299   : > { %2264 = vst.msk [vmem:[%s4655_s26 + $0x70] sm:$0xff] %vm2249_vm7, %v2231_v55  ;;  %v2234_v17 = vadd.f32 %v2763_v15, %v4619_v1 }
 0x29a   : > { %v2138_v52 = vpop.f32.mrf.mxu1 }
 0x29b   : > { %2267 = vst.msk [vmem:[%s4655_s26 + $0x88] sm:$0xff] %vm2249_vm7, %v2234_v17  ;;  %v2233_v40 = vadd.f32 %v2138_v52, %v4621_v4 }
 0x29c   : > { %v2766_v30 = vpop.f32.mrf.mxu1 }
 0x29d   : > { %2266 = vst.msk [vmem:[%s4655_s26 + $0x80] sm:$0xff] %vm2249_vm7, %v2233_v40  ;;  %v2236_v12 = vadd.f32 %v2766_v30, %v4623_v5 }
 0x29e   : > { %v2148_v43 = vpop.f32.mrf.mxu1 }
 0x29f   : > { %2269 = vst.msk [vmem:[%s4655_s26 + $0x98] sm:$0xff] %vm2249_vm7, %v2236_v12  ;;  %v2235_v22 = vadd.f32 %v2148_v43, %v4625_v21 }
 0x2a0   : > { %v2769_v7 = vpop.f32.mrf.mxu1 }
 0x2a1   : > { %2268 = vst.msk [vmem:[%s4655_s26 + $0x90] sm:$0xff] %vm2249_vm7, %v2235_v22  ;;  %v2238_v1 = vadd.f32 %v2769_v7, %v4627_v61 }
 0x2a2   : > { %v2158_v18 = vpop.f32.mrf.mxu1 }
 0x2a3   : > { %2271 = vst.msk [vmem:[%s4655_s26 + $0xa8] sm:$0xff] %vm2249_vm7, %v2238_v1  ;;  %v2237_v4 = vadd.f32 %v2158_v18, %v4629_v23 }
 0x2a4   : > { %v2772_v29 = vpop.f32.mrf.mxu1 }
 0x2a5   : > { %2270 = vst.msk [vmem:[%s4655_s26 + $0xa0] sm:$0xff] %vm2249_vm7, %v2237_v4  ;;  %v2240_v5 = vadd.f32 %v2772_v29, %v4631_v58 }
 0x2a6   : > { %v2168_v0 = vpop.f32.mrf.mxu1 }
 0x2a7   : > { %2273 = vst.msk [vmem:[%s4655_s26 + $0xb8] sm:$0xff] %vm2249_vm7, %v2240_v5  ;;  %v2239_v21 = vadd.f32 %v2168_v0, %v4633_v47 }
 0x2a8   : > { %v2775_v3 = vpop.f32.mrf.mxu1 }
 0x2a9   : > { %2272 = vst.msk [vmem:[%s4655_s26 + $0xb0] sm:$0xff] %vm2249_vm7, %v2239_v21  ;;  %v2242_v61 = vadd.f32 %v2775_v3, %v4635_v36 }
 0x2aa   : > { %v2178_v60 = vpop.f32.mrf.mxu1 }
 0x2ab   : > { %2275 = vst.msk [vmem:[%s4655_s26 + $0xc8] sm:$0xff] %vm2249_vm7, %v2242_v61  ;;  %v2241_v23 = vadd.f32 %v2178_v60, %v4637_v31 }
 0x2ac   : > { %v2778_v10 = vpop.f32.mrf.mxu1 }
 0x2ad   : > { %2274 = vst.msk [vmem:[%s4655_s26 + $0xc0] sm:$0xff] %vm2249_vm7, %v2241_v23  ;;  %v2244_v58 = vadd.f32 %v2778_v10, %v4639_v33 }
 0x2ae   : > { %v2188_v47 = vpop.f32.mrf.mxu1 }
 0x2af   : > { %2277 = vst.msk [vmem:[%s4655_s26 + $0xd8] sm:$0xff] %vm2249_vm7, %v2244_v58  ;;  %v2243_v28 = vadd.f32 %v2188_v47, %v4641_v34 }
 0x2b0   : > { %v2781_v20 = vpop.f32.mrf.mxu1 }
 0x2b1   : > { %2276 = vst.msk [vmem:[%s4655_s26 + $0xd0] sm:$0xff] %vm2249_vm7, %v2243_v28  ;;  %v2246_v36 = vadd.f32 %v2781_v20, %v4643_v8 }
 0x2b2   : > { %v2198_v63 = vpop.f32.mrf.mxu1 }
 0x2b3   : > { %2279 = vst.msk [vmem:[%s4655_s26 + $0xe8] sm:$0xff] %vm2249_vm7, %v2246_v36  ;;  %v2245_v31 = vadd.f32 %v2198_v63, %v4645_v56 }
 0x2b4   : > { %v2784_v24 = vpop.f32.mrf.mxu1 }
 0x2b5   : > { %2278 = vst.msk [vmem:[%s4655_s26 + $0xe0] sm:$0xff] %vm2249_vm7, %v2245_v31  ;;  %v2248_v33 = vadd.f32 %v2784_v24, %v4647_v57 }
 0x2b6   : > { %v2208_v32 = vpop.f32.mrf.mxu1 }
 0x2b7   : > { %2281 = vst.msk [vmem:[%s4655_s26 + $0xf8] sm:$0xff] %vm2249_vm7, %v2248_v33  ;;  %v2247_v34 = vadd.f32 %v2208_v32, %v4650_v44 }
 0x2b9   : > { %2280 = vst.msk [vmem:[%s4655_s26 + $0xf0] sm:$0xff] %vm2249_vm7, %v2247_v34 }
 0x2ba PF: > { %s15_s20 = sadd.s32 1, %s2839_s20   ;;  %s4952_s18 = smov %s2835_s19 }
 0x2bb   : > { %p12_p5 = scmp.ge.s32.totalorder %s15_s20, 4   ;;  %s4953_s19 = smov %s4955_s21 }
 0x2bd   :  { %14 = sbr.rel (!%p12_p5) target bundleno = 2 (0x2), region = 72 }

</bundles_post_ra>
